<compile_context>
chip_gen: v6e
topology: v6e:2x2x1
jax: 0.10.0
libtpu: 0.0.40
codegen_flags: <defaults>
</compile_context>

<pallas_src>
import functools

import jax
import jax.numpy as jnp
from jax import lax
from jax.experimental import pallas as pl
from jax.experimental.pallas import tpu as pltpu


def _prior_integration_kernel(gamma_ref,   # SMEM (1,) f32
                              x_ref,       # (C, TQ)     f32  query tile of x
                              p_ref,       # (Cp, N)     bf16 full prior (per batch)
                              m_ref,       # (C_pad, Cp) bf16 [Wq^T Wk ; bq^T Wk ; 0]
                              wv_ref,      # (C, Cp)     bf16 value conv weight
                              bv_ref,      # (C, 1)      f32  value conv bias
                              o_ref,       # (C, TQ)     f32
                              v_sc,        # (C, N)      bf16 scratch (per batch)
                              mp_sc,       # (C_pad, N)  bf16 scratch (per batch)
                              *, exp_dtype):
    # ---- per-batch projections: only on the first query tile of each batch -------------
    @pl.when(pl.program_id(1) == 0)
    def _():
        p = p_ref[...]                                                        # (Cp, N)
        v = jnp.dot(wv_ref[...], p, preferred_element_type=jnp.float32) + bv_ref[...]
        v_sc[...] = v.astype(jnp.bfloat16)                                    # (C, N)
        mp = jnp.dot(m_ref[...], p, preferred_element_type=jnp.float32)       # (C_pad, N)
        mp_sc[...] = mp.astype(jnp.bfloat16)

    x = x_ref[...]                                                            # (C, TQ) f32
    C, TQ = x.shape
    C_pad = mp_sc.shape[0]

    # Augmented query operand: the ones rows pick up the folded key-bias row of mp
    # (rows past C+1 of mp are zero, so extra ones contribute nothing).
    x_aug = jnp.concatenate(
        [x, jnp.ones((C_pad - C, TQ), jnp.float32)], axis=0).astype(jnp.bfloat16)

    # energyT[j, i] = sum_c mp[c, j] * x_aug[c, i]   -> (N, TQ), bias already included.
    energyT = lax.dot_general(
        mp_sc[...], x_aug,
        dimension_numbers=(((0,), (0,)), ((), ())),
        preferred_element_type=jnp.float32)

    # Numerically-stable softmax over the key axis (axis 0, full extent present).
    col_max = jnp.max(energyT, axis=0, keepdims=True)                         # (1, TQ)
    e = jnp.exp((energyT - col_max).astype(exp_dtype))                        # (N, TQ)
    denom = jnp.sum(e, axis=0, keepdims=True, dtype=jnp.float32)              # (1, TQ)

    # Deferred normalization: unnormalized value matmul (canonical (C,N)@(N,TQ)),
    # then a cheap per-column scale on the small (C, TQ) result.
    out_un = jnp.dot(v_sc[...], e.astype(jnp.bfloat16),
                     preferred_element_type=jnp.float32)                      # (C, TQ)
    inv = pl.reciprocal(denom, approx=True)                                   # (1, TQ)
    o_ref[...] = (gamma_ref[0] * (out_un * inv) + x).astype(o_ref.dtype)


def _round_up(v, m):
    return (v + m - 1) // m * m


def _vmem_estimate_bytes(N, C, Cp, C_pad, TQ):
    f32, bf16 = 4, 2
    tile_io = 2 * 2 * C * TQ * f32              # double-buffered x tile + out tile (f32)
    prior = 2 * Cp * N * bf16                   # prior block, double-buffered, bf16
    scratch = (C + C_pad) * N * bf16            # persistent v / mp scratch
    scores = N * TQ * (f32 + f32 + bf16)        # energyT + temps + e
    small = (2 * (C_pad + C) * Cp) * bf16 + 2 * C_pad * TQ * bf16 + 2 * C * TQ * f32
    return tile_io + prior + scratch + scores + small + (1 << 20)


def _choose_tq(N, C, Cp, C_pad, budget_bytes):
    """Largest query tile that is N or a multiple-of-128 divisor of N within budget."""
    if N % 128 != 0:
        return N                                # (8,128) rule: must use full extent
    divisors = [d for d in range(128, N, 128) if N % d == 0]
    candidates = [N] + sorted(divisors, reverse=True)
    for tq in candidates:
        if _vmem_estimate_bytes(N, C, Cp, C_pad, tq) <= budget_bytes:
            return tq
    # TODO(synk): for very large N on v7x a flash-style online softmax over key chunks
    # would keep TQ >= 512; fall back to the smallest legal tile for now.
    return candidates[-1]


def _tpu_vmem_bytes():
    try:
        return int(pltpu.get_tpu_info().vmem_capacity_bytes)
    except Exception:
        pass
    try:
        kind = jax.devices()[0].device_kind.lower()
    except Exception:
        kind = ""
    return (64 << 20) if "v7" in kind else (128 << 20)


def _use_bf16_exp():
    try:
        kind = jax.devices()[0].device_kind.lower()
    except Exception:
        return False
    return ("v6" in kind) or ("v7" in kind)     # v5e/older EUP has no bf16


def prior_integration(x, prior, params):
    """x: (B, C, W, H) f32, prior: (B, Cp, W, H) f32. Returns (B, C, W, H) f32."""
    B, C, W, H = x.shape
    Cp = prior.shape[1]
    N = W * H
    C_pad = _round_up(C + 1, 8)

    # Channel-first flatten: lane-dense in/out, no wrapper transposes.
    x_flat = x.reshape(B, C, N)
    p_flat = prior.reshape(B, Cp, N).astype(jnp.bfloat16)

    wq, bq = params["wq"], params["bq"]          # (Cq, C), (Cq,)
    wk = params["wk"]                            # (Cq, Cp)  (bk cancels under softmax)
    wv, bv = params["wv"], params["bv"]          # (C, Cp), (C,)
    gamma = params["gamma"].astype(jnp.float32)  # (1,)

    # Fold the 1x1 query/key convs; append the key-bias row (bq^T Wk) to the fused
    # matrix so the kernel's ones-padded query operand applies it inside the MXU.
    m_fused = wq.T @ wk                          # (C, Cp)
    br = bq @ wk                                 # (Cp,)
    m_aug = jnp.zeros((C_pad, Cp), jnp.float32).at[:C, :].set(m_fused).at[C, :].set(br)
    m_aug = m_aug.astype(jnp.bfloat16)
    wv_bf = wv.astype(jnp.bfloat16)
    bv_col = bv.reshape(C, 1).astype(jnp.float32)

    vmem_phys = _tpu_vmem_bytes()
    budget = int(vmem_phys * 0.62)               # ~40 MiB on v7x, ~80 MiB on v5e/v6e
    TQ = _choose_tq(N, C, Cp, C_pad, budget)
    est = _vmem_estimate_bytes(N, C, Cp, C_pad, TQ)
    cap = (56 << 20) if vmem_phys <= (64 << 20) else (108 << 20)
    vmem_limit = int(min(cap, max(32 << 20, est * 3 // 2)))

    exp_dtype = jnp.bfloat16 if _use_bf16_exp() else jnp.float32
    grid = (B, N // TQ)

    grid_spec = pltpu.PrefetchScalarGridSpec(
        num_scalar_prefetch=0,
        grid=grid,
        in_specs=[
            pl.BlockSpec(memory_space=pltpu.MemorySpace.SMEM),       # gamma (1,)
            pl.BlockSpec((None, C, TQ), lambda b, t: (b, 0, t)),     # x query tile
            pl.BlockSpec((None, Cp, N), lambda b, t: (b, 0, 0)),     # prior (per batch)
            pl.BlockSpec((C_pad, Cp), lambda b, t: (0, 0)),          # m_aug
            pl.BlockSpec((C, Cp), lambda b, t: (0, 0)),              # wv
            pl.BlockSpec((C, 1), lambda b, t: (0, 0)),               # bv
        ],
        out_specs=pl.BlockSpec((None, C, TQ), lambda b, t: (b, 0, t)),
        scratch_shapes=[
            pltpu.VMEM((C, N), jnp.bfloat16),        # value projection (per batch)
            pltpu.VMEM((C_pad, N), jnp.bfloat16),    # fused-qk projection + bias row
        ],
    )

    cost = pl.CostEstimate(
        flops=int(B * (2 * (C + C_pad) * N * N + 2 * (C + C_pad) * Cp * N)),
        transcendentals=int(B * N * N),
        bytes_accessed=int(B * (2 * C * N * 4 + Cp * N * 2)
                           + (C_pad + C) * Cp * 2 + C * 4 + 4),
    )

    kernel = functools.partial(_prior_integration_kernel, exp_dtype=exp_dtype)

    out_flat = pl.pallas_call(
        kernel,
        out_shape=jax.ShapeDtypeStruct((B, C, N), x.dtype),
        grid_spec=grid_spec,
        compiler_params=pltpu.CompilerParams(
            # Batch axis parallel (megacore when B >= 2); query-tile axis must be
            # "arbitrary" so the per-batch scratch is written before the tiles using it.
            dimension_semantics=("parallel", "arbitrary"),
            vmem_limit_bytes=vmem_limit,
        ),
        cost_estimate=cost,
    )(gamma, x_flat, p_flat, m_aug, wv_bf, bv_col)

    return out_flat.reshape(B, C, W, H)


def init_params(key, in_channels, prior_channels):
    """Conv2d(kernel_size=1) weights in conv form: (out_ch, in_ch)."""
    C, Cp = in_channels, prior_channels
    Cq = C // 8
    ks = jax.random.split(key, 6)
    s = 0.1
    return {
        "wq": s * jax.random.normal(ks[0], (Cq, C), jnp.float32),
        "bq": s * jax.random.normal(ks[1], (Cq,), jnp.float32),
        "wk": s * jax.random.normal(ks[2], (Cq, Cp), jnp.float32),
        "bk": s * jax.random.normal(ks[3], (Cq,), jnp.float32),
        "wv": s * jax.random.normal(ks[4], (C, Cp), jnp.float32),
        "bv": s * jax.random.normal(ks[5], (C,), jnp.float32),
        # nn.Parameter(torch.zeros(1)) -> gamma initialized to 0
        "gamma": jnp.zeros((1,), jnp.float32),
    }


def reference(x, prior, params):
    """Pure-JAX f32 reference mirroring the PyTorch forward exactly."""
    B, C, W, H = x.shape
    N = W * H
    xf = x.reshape(B, C, N)
    pf = prior.reshape(B, prior.shape[1], N)
    q = jnp.einsum("qc,bcn->bqn", params["wq"], xf) + params["bq"][None, :, None]
    k = jnp.einsum("qp,bpn->bqn", params["wk"], pf) + params["bk"][None, :, None]
    v = jnp.einsum("cp,bpn->bcn", params["wv"], pf) + params["bv"][None, :, None]
    energy = jnp.einsum("bqi,bqj->bij", q, k)            # torch.bmm(query, key)
    att = jax.nn.softmax(energy, axis=-1)
    out = jnp.einsum("bcj,bij->bci", v, att)             # torch.bmm(value, att^T)
    out = params["gamma"][0] * out + xf
    return out.reshape(B, C, W, H)


if __name__ == "__main__":
    key = jax.random.PRNGKey(0)
    kx, kp, kw = jax.random.split(key, 3)

    B, C, Cp, W, H = 2, 32, 16, 16, 16   # Cq = C//8 = 4, N = 256
    x = jax.random.normal(kx, (B, C, W, H), jnp.float32)
    prior = jax.random.normal(kp, (B, Cp, W, H), jnp.float32)

    params = init_params(kw, C, Cp)
    # gamma is 0 at init (as in the PyTorch module); nonzero copy exercises attention.
    params_nz = dict(params, gamma=jnp.full((1,), 0.5, jnp.float32))

    out = prior_integration(x, prior, params)
    out_nz = prior_integration(x, prior, params_nz)
    jax.block_until_ready(out)
    jax.block_until_ready(out_nz)

    ref = reference(x, prior, params)
    ref_nz = reference(x, prior, params_nz)
    # gamma = 0 path: pure residual, exact.
    assert jnp.allclose(out, ref, atol=1e-4, rtol=1e-4)
    # nonzero gamma: bf16 operands / bf16 exp with f32 accumulation -> relaxed tolerance.
    assert jnp.allclose(out_nz, ref_nz, atol=2e-2, rtol=2e-2)

    print("KERNEL_OK")
</pallas_src>

<mosaic_0001>
module attributes {stable_mosaic.version = 11 : i64} {
  func.func @_prior_integration_kernel(%arg0: i32, %arg1: i32, %arg2: memref<1xf32, #tpu.memory_space<smem>>, %arg3: memref<1x32x256xf32, #tpu.memory_space<vmem>>, %arg4: memref<1x16x256xbf16, #tpu.memory_space<vmem>>, %arg5: memref<40x16xbf16, #tpu.memory_space<vmem>>, %arg6: memref<32x16xbf16, #tpu.memory_space<vmem>>, %arg7: memref<32x1xf32, #tpu.memory_space<vmem>>, %arg8: memref<1x32x256xf32, #tpu.memory_space<vmem>>, %arg9: memref<32x256xbf16, #tpu.memory_space<vmem>>, %arg10: memref<40x256xbf16, #tpu.memory_space<vmem>>) attributes {dimension_semantics = [#tpu.dimension_semantics<parallel>, #tpu.dimension_semantics<arbitrary>], iteration_bounds = array<i64: 2, 1>, scalar_prefetch = 0 : i64, scratch_operands = 2 : i64, tpu.core_type = #tpu.core_type<tc>, window_params = [{transform_indices = @transform_0, window_bounds = array<i64: 1>}, {transform_indices = @transform_1, window_bounds = array<i64: 1, 32, 256>}, {transform_indices = @transform_2, window_bounds = array<i64: 1, 16, 256>}, {pipeline_mode = #tpu.pipeline_mode<synchronous>, transform_indices = @transform_3, window_bounds = array<i64: 40, 16>}, {pipeline_mode = #tpu.pipeline_mode<synchronous>, transform_indices = @transform_4, window_bounds = array<i64: 32, 16>}, {pipeline_mode = #tpu.pipeline_mode<synchronous>, transform_indices = @transform_5, window_bounds = array<i64: 32, 1>}, {transform_indices = @transform_6, window_bounds = array<i64: 1, 32, 256>}]} {
    %c0_i32 = arith.constant 0 : i32
    %0 = arith.cmpi eq, %arg1, %c0_i32 : i32
    %1 = arith.extui %0 : i1 to i32
    %c0_i32_0 = arith.constant 0 : i32
    %2 = arith.cmpi ne, %1, %c0_i32_0 : i32
    scf.if %2 {
      %c0_15 = arith.constant 0 : index
      %c0_16 = arith.constant 0 : index
      %c0_17 = arith.constant 0 : index
      %30 = vector.load %arg4[%c0_15, %c0_16, %c0_17] : memref<1x16x256xbf16, #tpu.memory_space<vmem>>, vector<1x16x256xbf16>
      %31 = vector.shape_cast %30 : vector<1x16x256xbf16> to vector<16x256xbf16>
      %c0_18 = arith.constant 0 : index
      %c0_19 = arith.constant 0 : index
      %32 = vector.load %arg6[%c0_18, %c0_19] : memref<32x16xbf16, #tpu.memory_space<vmem>>, vector<32x16xbf16>
      %cst_20 = arith.constant dense<0.000000e+00> : vector<32x256xf32>
      %33 = tpu.matmul %32, %31, %cst_20 {dimension_numbers = #tpu.dot_dimension_numbers<[1], [0], [0], [1], [0, 0, 1, 1], [], []>} : vector<32x16xbf16>, vector<16x256xbf16>, vector<32x256xf32> -> vector<32x256xf32>
      %c0_21 = arith.constant 0 : index
      %c0_22 = arith.constant 0 : index
      %34 = vector.load %arg7[%c0_21, %c0_22] : memref<32x1xf32, #tpu.memory_space<vmem>>, vector<32x1xf32>
      %35 = vector.broadcast %34 : vector<32x1xf32> to vector<32x256xf32>
      %36 = arith.addf %33, %35 : vector<32x256xf32>
      %37 = arith.truncf %36 : vector<32x256xf32> to vector<32x256xbf16>
      %c0_23 = arith.constant 0 : index
      %c0_24 = arith.constant 0 : index
      %38 = vector.load %arg9[%c0_23, %c0_24] : memref<32x256xbf16, #tpu.memory_space<vmem>>, vector<32x256xbf16>
      tpu.vector_store %arg9[%c0_23, %c0_24], %37 {strides = array<i32>} : memref<32x256xbf16, #tpu.memory_space<vmem>>, vector<32x256xbf16>,
      %c0_25 = arith.constant 0 : index
      %c0_26 = arith.constant 0 : index
      %39 = vector.load %arg5[%c0_25, %c0_26] : memref<40x16xbf16, #tpu.memory_space<vmem>>, vector<40x16xbf16>
      %cst_27 = arith.constant dense<0.000000e+00> : vector<40x256xf32>
      %40 = tpu.matmul %39, %31, %cst_27 {dimension_numbers = #tpu.dot_dimension_numbers<[1], [0], [0], [1], [0, 0, 1, 1], [], []>} : vector<40x16xbf16>, vector<16x256xbf16>, vector<40x256xf32> -> vector<40x256xf32>
      %41 = arith.truncf %40 : vector<40x256xf32> to vector<40x256xbf16>
      %c0_28 = arith.constant 0 : index
      %c0_29 = arith.constant 0 : index
      %42 = vector.load %arg10[%c0_28, %c0_29] : memref<40x256xbf16, #tpu.memory_space<vmem>>, vector<40x256xbf16>
      tpu.vector_store %arg10[%c0_28, %c0_29], %41 {strides = array<i32>} : memref<40x256xbf16, #tpu.memory_space<vmem>>, vector<40x256xbf16>,
    } else {
    }
    %c0 = arith.constant 0 : index
    %c0_1 = arith.constant 0 : index
    %c0_2 = arith.constant 0 : index
    %3 = vector.load %arg3[%c0, %c0_1, %c0_2] : memref<1x32x256xf32, #tpu.memory_space<vmem>>, vector<1x32x256xf32>
    %4 = vector.shape_cast %3 : vector<1x32x256xf32> to vector<32x256xf32>
    %cst = arith.constant 1.000000e+00 : f32
    %5 = vector.broadcast %cst : f32 to vector<8x256xf32>
    %6 = tpu.concatenate %4, %5 in 0 : vector<32x256xf32>, vector<8x256xf32> -> vector<40x256xf32>
    %7 = arith.truncf %6 : vector<40x256xf32> to vector<40x256xbf16>
    %c0_3 = arith.constant 0 : index
    %c0_4 = arith.constant 0 : index
    %8 = vector.load %arg10[%c0_3, %c0_4] : memref<40x256xbf16, #tpu.memory_space<vmem>>, vector<40x256xbf16>
    %cst_5 = arith.constant dense<0.000000e+00> : vector<256x256xf32>
    %9 = tpu.matmul %8, %7, %cst_5 {dimension_numbers = #tpu.dot_dimension_numbers<[0], [0], [1], [1], [0, 1, 1, 1], [], []>} : vector<40x256xbf16>, vector<40x256xbf16>, vector<256x256xf32> -> vector<256x256xf32>
    %cst_6 = arith.constant dense<0xFF800000> : vector<256xf32>
    %10 = vector.multi_reduction <maximumf>, %9, %cst_6 [0] : vector<256x256xf32> to vector<256xf32>
    %11 = vector.shape_cast %10 : vector<256xf32> to vector<1x256xf32>
    %12 = vector.broadcast %11 : vector<1x256xf32> to vector<256x256xf32>
    %13 = arith.subf %9, %12 : vector<256x256xf32>
    %14 = math.exp %13 : vector<256x256xf32>
    %cst_7 = arith.constant dense<0.000000e+00> : vector<256xf32>
    %15 = vector.multi_reduction <add>, %14, %cst_7 [0] : vector<256x256xf32> to vector<256xf32>
    %16 = vector.shape_cast %15 : vector<256xf32> to vector<1x256xf32>
    %c0_8 = arith.constant 0 : index
    %c0_9 = arith.constant 0 : index
    %17 = vector.load %arg9[%c0_8, %c0_9] : memref<32x256xbf16, #tpu.memory_space<vmem>>, vector<32x256xbf16>
    %18 = arith.truncf %14 : vector<256x256xf32> to vector<256x256xbf16>
    %cst_10 = arith.constant dense<0.000000e+00> : vector<32x256xf32>
    %19 = tpu.matmul %17, %18, %cst_10 {dimension_numbers = #tpu.dot_dimension_numbers<[1], [0], [0], [1], [0, 0, 1, 1], [], []>} : vector<32x256xbf16>, vector<256x256xbf16>, vector<32x256xf32> -> vector<32x256xf32>
    %20 = tpu.reciprocal %16 {approx = true} : vector<1x256xf32> -> vector<1x256xf32>
    %c0_11 = arith.constant 0 : index
    %21 = memref.load %arg2[%c0_11] : memref<1xf32, #tpu.memory_space<smem>>
    %22 = vector.broadcast %20 : vector<1x256xf32> to vector<32x256xf32>
    %23 = arith.mulf %19, %22 : vector<32x256xf32>
    %24 = vector.broadcast %21 : f32 to vector<32x256xf32>
    %25 = arith.mulf %24, %23 : vector<32x256xf32>
    %26 = arith.addf %25, %4 : vector<32x256xf32>
    %c0_12 = arith.constant 0 : index
    %c0_13 = arith.constant 0 : index
    %c0_14 = arith.constant 0 : index
    %27 = vector.load %arg8[%c0_12, %c0_13, %c0_14] : memref<1x32x256xf32, #tpu.memory_space<vmem>>, vector<1x32x256xf32>
    %28 = vector.shape_cast %27 : vector<1x32x256xf32> to vector<32x256xf32>
    %29 = vector.shape_cast %26 : vector<32x256xf32> to vector<1x32x256xf32>
    tpu.vector_store %arg8[%c0_12, %c0_13, %c0_14], %29 {strides = array<i32>} : memref<1x32x256xf32, #tpu.memory_space<vmem>>, vector<1x32x256xf32>,
    return
  }
  func.func @transform_0(%arg0: i32, %arg1: i32) -> i32 {
    %c0_i32 = arith.constant 0 : i32
    %c0_i32_0 = arith.constant 0 : i32
    return %c0_i32 : i32
  }
  func.func @transform_1(%arg0: i32, %arg1: i32) -> (i32, i32, i32) {
    %c0_i32 = arith.constant 0 : i32
    %c0_i32_0 = arith.constant 0 : i32
    return %arg0, %c0_i32, %arg1 : i32, i32, i32
  }
  func.func @transform_2(%arg0: i32, %arg1: i32) -> (i32, i32, i32) {
    %c0_i32 = arith.constant 0 : i32
    %c0_i32_0 = arith.constant 0 : i32
    %c0_i32_1 = arith.constant 0 : i32
    return %arg0, %c0_i32, %c0_i32_0 : i32, i32, i32
  }
  func.func @transform_3(%arg0: i32, %arg1: i32) -> (i32, i32) {
    %c0_i32 = arith.constant 0 : i32
    %c0_i32_0 = arith.constant 0 : i32
    %c0_i32_1 = arith.constant 0 : i32
    return %c0_i32, %c0_i32_0 : i32, i32
  }
  func.func @transform_4(%arg0: i32, %arg1: i32) -> (i32, i32) {
    %c0_i32 = arith.constant 0 : i32
    %c0_i32_0 = arith.constant 0 : i32
    %c0_i32_1 = arith.constant 0 : i32
    return %c0_i32, %c0_i32_0 : i32, i32
  }
  func.func @transform_5(%arg0: i32, %arg1: i32) -> (i32, i32) {
    %c0_i32 = arith.constant 0 : i32
    %c0_i32_0 = arith.constant 0 : i32
    %c0_i32_1 = arith.constant 0 : i32
    return %c0_i32, %c0_i32_0 : i32, i32
  }
  func.func @transform_6(%arg0: i32, %arg1: i32) -> (i32, i32, i32) {
    %c0_i32 = arith.constant 0 : i32
    %c0_i32_0 = arith.constant 0 : i32
    return %arg0, %c0_i32, %arg1 : i32, i32, i32
  }
}

</mosaic_0001>

<bundles_post_ra>
// kernel: tpu_custom_call.1
= control target key start
LH: loop header
LB: loop body
LE: loop exit
PB: predicated region body
PF: predicated region fallthrough
CT: control target
= control target key end

     0   :  { %s2771_s0 = inlined_call_operand.<no memory space> [shape: f32[1], index: 0, kind: input, shape index: {}]   ;;  %s2772_s1 = inlined_call_operand.hbm [shape: f32[2,32,256], index: 1, kind: input, shape index: {}]   ;;  %s2773_s2 = inlined_call_operand.vmem [shape: bf16[2,16,256], index: 2, kind: input, shape index: {}]   ;;  %s2774_s3 = inlined_call_operand.vmem [shape: bf16[40,16], index: 3, kind: input, shape index: {}]   ;;  %s2775_s4 = inlined_call_operand.vmem [shape: bf16[32,16], index: 4, kind: input, shape index: {}]   ;;  %s2776_s5 = inlined_call_operand.vmem [shape: f32[32,1], index: 5, kind: input, shape index: {}]   ;;  %s2777_s6 = inlined_call_operand.hbm [shape: f32[2,32,256], index: 6, kind: output, shape index: {}]  }
   0x1   :  { %11 = sst [smem:[#allocation4]] %s2771_s0 }
   0x2   :  { %12 = vsyncpa [#allocation6], 0 }
   0x3   :  { %14 = vsyncpa [#allocation6 + $0x1], 0 }
   0x4   :  { %15 = vsyncpa [#allocation7], 0 }
   0x5   :  { %17 = vsyncpa [#allocation7 + $0x1], 0  ;;  %s1963_s23 = smov 0   ;;  %s1965_s24 = smov 0  }
   0x6   :  { %s1967_s25 = smov 0   ;;  %s1969_s26 = smov 0  }
   0x7   :  { %s1971_s27 = smov 0   ;;  %s1973_s28 = smov 0  }
   0x8 LB: > { %s1502_s0 = sadd.s32 4294967295, %s1915_s28   ;;  %s1503_s29 = sadd.s32 4294967294, %s1915_s28   ;;  %s1915_s28 = sphi %s1973_s28, %s23_s28   ;;  %s1911_s27 = sphi %s1971_s27, %s2869_s27   ;;  %s1907_s26 = sphi %s1969_s26, %s2868_s26   ;;  %s1903_s25 = sphi %s1967_s25, %s2867_s25   ;;  %s1899_s24 = sphi %s1965_s24, %s2866_s24   ;;  %s1895_s23 = sphi %s1963_s23, %s2865_s23  }
   0x9   : > { %s35_s30 = sadd.s32 1, %s1911_s27  ;;  %s65_s7 = sadd.s32 1, %s1903_s25 }
   0xa   : > { %p37_p0 = scmp.ge.s32.totalorder %s35_s30, 2  ;;  %p72_p1 = scmp.ne.s32.totalorder %s1903_s25, %s1899_s24 }
   0xb   : > { %p73_p2 = scmp.eq.s32.totalorder %s1915_s28, 0  ;;  %p78_p3 = scmp.ne.s32.totalorder %s1899_s24, %s1895_s23 }
   0xc   : > { %s2871_s30 = smov (%p37_p0, %s35_s30), 0  ;;  %p79_p5 = scmp.eq.s32.totalorder %s1502_s0, 0 }
   0xd   : > { %p2004_p4 = por %p73_p2, %p72_p1  ;;  %s60_s9 = ssub.s32 %s1911_s27, %s2871_s30 }
   0xe   : > { %p193_p6 = scmp.eq.s32.totalorder %s1502_s0, 1  ;;  %p63_p7 = scmp.eq.s32.totalorder %s60_s9, 0 }
   0xf   : > { %p2010_p8 = por %p79_p5, %p78_p3  ;;  %p199_p10 = scmp.eq.s32.totalorder %s1503_s29, 1 }
  0x10   : > { %p2014_p9 = por %p193_p6, %p72_p1  ;;  %p1601_p13 = scmp.lt.s32.totalorder %s1915_s28, 2 }
  0x11   : > { %s2019_s12 = scalar_select %p63_p7, %s1903_s25, %s65_s7  }
  0x12   : > { %p2021_p11 = por %p199_p10, %p78_p3  ;;  %s231_s14 = sand.u32 1, %s1903_s25  }
  0x13   : > { %s1506_s15 = sshll.u32 %s231_s14, 6  ;;  %s1567_s16 = sshll.u32 %s1911_s27, 10 }
  0x14   : > { %s243_s19 = scalar_lea.hbm %s2772_s1, %s1567_s16  ;;  %s235_s20 = scalar_lea.vmem [#allocation5], %s1506_s15 }
  0x15   : > { %s244_s21 = sshll.u32 %s235_s20, 4  ;;  %p2034_p0 = pnand %p1601_p13, %p2004_p4  ;;  %s245_s21 = int_to_ptr.vmem [resolvable:$true] %s244_s21 }
  0x16   : > { %p1509_p1 = scmp.ge.s32.totalorder %s1915_s28, 1  ;;  %s232_s0 = scalar_lea.sflag [#allocation6], %s231_s14 }
  0x17   : > { %p1809_p2 = pneg %p2034_p0  ;;  %s1820_s29 = scalar_lea.vmem %s245_s21, 1024 }
  0x18   : > { %p1821_p3 = scmp.ne.s32.totalorder %s245_s21, %s1820_s29  ;;  %s1917_s7 = smov [#allocation5]  }
  0x19   : > { %s1825_s9 = sshll.u32 %s1917_s7, 4  ;;  %s1826_s9 = int_to_ptr.vmem [resolvable:$false] %s1825_s9 }
  0x1a   : > { %p1823_p5 = pnand %p1821_p3, %p1809_p2  ;;  %s1827_s15 = scalar_lea.vmem %s1826_s9, 2048 }
  0x1b   : > { %p1828_p7 = scmp.lt.s32.totalorder %s245_s21, %s1826_s9  ;;  %p1829_p10 = scmp.lt.s32.totalorder %s1827_s15, %s1820_s29 }
  0x1c   : > { %p1824_p6 = pneg %p1823_p5 }
  0x1d   : > { %p1830_p12 = por %p1829_p10, %p1828_p7 }
  0x1f   : > { %p1831_p4 = pnand %p1830_p12, %p1824_p6 }
  0x21   : > { %1834 = shalt.err (!%p1831_p4)
}
  0x22   : > { %s1918_s8 = smov 256   ;;  %s1919_s14 = smov 16  }
  0x23   : > { %1596 = dma.hbm_to_vmem [thread:$0]  (!%p2034_p0), %s243_s19, 1024, %s245_s21, %s232_s0, %s1918_s8, %s1918_s8, %s1919_s14  }
  0x24   : > { %p260_p13 = scmp.lt.s32.totalorder %s1915_s28, 3 }
  0x26   : > { %p261_p2 = pnand %p1509_p1, %p260_p13 }
  0x28   : > { %264 = sbr.rel (%p261_p2) target bundleno = 1066 (0x42a), region = 44 }
  0x2d   : > { %s2047_s16 = sand.u32 1, %s1899_s24  }
  0x2e   : > { %s1510_s17 = sshll.u32 %s2047_s16, 6  ;;  %s267_s18 = scalar_lea.sflag [#allocation6], %s2047_s16 }
  0x2f   : > { %s2053_s20 = scalar_lea.vmem [#allocation5], %s1510_s17 }
  0x30   : > { %1886 = dma.done.wait (%p2010_p8), %s267_s18, 1024  }
  0x31   : > { %1888 = vsyncadd (%p2010_p8), %s267_s18, 4294966272  ;;  %p305_p12 = scmp.lt.s32.totalorder %s1907_s26, 1  ;;  %v1920_v0 = vmov 0   ;;  %v1662_v3 = vld [vmem:[%s2775_s4] sm:$0xff]   ;;  %vm366_vm0 = vcmask 130048   ;;  %v1663_v4 = vld [vmem:[%s2775_s4 + $0x8] sm:$0xff]  }
  0x32   : > { %405 = vmatprep.mubr.bf16.mxu1 %v1920_v0  ;;  %741 = vmatprep.mubr.bf16.mxu0 %v1920_v0  ;;  %v1664_v5 = vld [vmem:[%s2774_s3] sm:$0xff]   ;;  %v1665_v6 = vld [vmem:[%s2774_s3 + $0x8] sm:$0xff]   ;;  %v1666_v7 = vld [vmem:[%s2774_s3 + $0x10] ss:$0 sps:$4 sm:$0xff]   ;;  %vm705_vm1 = vcmask 1043456   ;;  %vm656_vm2 = vcmask 326656  }
  0x33   : > { %s306_s19 = scalar_select %p305_p12, %s1907_s26, 1  ;;  %v584_v8 = vld [vmem:[%s2053_s20 + $0x28] sm:$0xff]  ;;  %v586_v9 = vld [vmem:[%s2053_s20 + $0x38] sm:$0xff]  ;;  %v583_v10 = vld [vmem:[%s2053_s20 + $0x20] sm:$0xff]  ;;  %v1921_v11 = vmov 1.0|1.0  }
  0x34   : > { %1541 = vmatprep.subr.msk.bf16.mxu0 %vm705_vm1, %v1921_v11  ;;  %v707_v12 = vsel %vm705_vm1, 1.0|1.0, %v1920_v0  ;;  %v590_v13 = vpack.c.bf16 %v586_v9, %v584_v8  ;;  %v585_v14 = vld [vmem:[%s2053_s20 + $0x30] sm:$0xff]  ;;  %v580_v15 = vld [vmem:[%s2053_s20 + $0x8] sm:$0xff]  ;;  %v582_v16 = vld [vmem:[%s2053_s20 + $0x18] sm:$0xff]  ;;  %s1353_s18 = sld [smem:[#allocation4]] }
  0x35   : > { %s1568_s21 = sshll.u32 %s306_s19, 4  ;;  %720 = vmatpush1.bf16.msra.mxu0 %v707_v12  ;;  %v589_v17 = vpack.c.bf16 %v585_v14, %v583_v10  ;;  %v588_v18 = vpack.c.bf16 %v582_v16, %v580_v15  ;;  %v579_v19 = vld [vmem:[%s2053_s20] sm:$0xff]  ;;  %v581_v20 = vld [vmem:[%s2053_s20 + $0x10] sm:$0xff]  ;;  %v323_v48 = vld [vmem:[%s2776_s5 + $0x8] sm:$0xff]  ;;  %s2699_s19 = scalar_lea.vmem [#allocation8], %s1510_s17 }
  0x36   : > { %s309_s29 = scalar_lea.vmem %s2773_s2, %s1568_s21  ;;  %721 = vmatprep.subr.bf16.mxu0 %v590_v13  ;;  %v587_v21 = vpack.c.bf16 %v581_v20, %v579_v19  ;;  %v322_v49 = vld [vmem:[%s2776_s5] sm:$0xff]  ;;  %v324_v50 = vld [vmem:[%s2776_s5 + $0x10] sm:$0xff]  ;;  %v325_v51 = vld [vmem:[%s2776_s5 + $0x18] sm:$0xff]  ;;  %s1578_s17 = sshll.u32 %s1907_s26, 10 }
  0x37   : > { %v1659_v1 = vld [vmem:[%s309_s29 + $0x4] ss:$8 sps:$4 sm:$0xff]   ;;  %v1661_v2 = vld [vmem:[%s309_s29] ss:$8 sps:$4 sm:$0xff]   ;;  %s1403_s21 = sshll.u32 %s2699_s19, 4  ;;  %s2718_s29 = scalar_lea.hbm %s2777_s6, %s1578_s17  ;;  %s2720_s21 = int_to_ptr.vmem [resolvable:$true] %s1403_s21 }
  0x38   : > { %387 = vmatprep.subr.bf16.mxu1 %v1659_v1  ;;  %s1388_s26 = scalar_lea.sflag [#allocation7], %s2047_s16  ;;  %s1835_s7 = scalar_lea.vmem %s2720_s21, 1024 }
  0x39   : > { %388 = vmatpush1.bf16.msra.mxu1 %v1661_v2  ;;  %722 = vmatpush1.bf16.msra.mxu0 %v589_v17  ;;  %p1836_p8 = scmp.ne.s32.totalorder %s2720_s21, %s1835_s7  ;;  %s1922_s10 = smov [#allocation8]  }
  0x3a   : > { %495 = vmatprep.subr.bf16.mxu1 %v1659_v1  ;;  %723 = vmatprep.subr.bf16.mxu0 %v588_v18  ;;  %s1839_s9 = sshll.u32 %s1922_s10, 4  ;;  %s1840_s9 = int_to_ptr.vmem [resolvable:$false] %s1839_s9 }
  0x3b   : > { %p1837_p0 = pnand %p1836_p8, %p2014_p9  ;;  %s1841_s15 = scalar_lea.vmem %s1840_s9, 2048 }
  0x3c   : > { %1518 = vmatmul.mubr.msk.bf16.vlgmr.msra.gmra.mxu1 %vm366_vm0, %v1662_v3  ;;  %p1842_p3 = scmp.lt.s32.totalorder %s2720_s21, %s1840_s9  ;;  %p1843_p5 = scmp.lt.s32.totalorder %s1841_s15, %s1835_s7 }
  0x3d   : > { %496 = vmatpush1.bf16.msra.mxu1 %v1661_v2  ;;  %415 = vmatprep.mubr.bf16.mxu1 %v1920_v0  ;;  %p1838_p1 = pneg %p1837_p0 }
  0x3e   : > { %724 = vmatpush1.bf16.msra.mxu0 %v587_v21  ;;  %p1844_p6 = por %p1843_p5, %p1842_p3 }
  0x40   : > { %p1845_p7 = pnand %p1844_p6, %p1838_p1 }
  0x44   : > { %1519 = vmatmul.mubr.msk.bf16.gmra.mxu1 %vm366_vm0, %v1663_v4 }
  0x45   : > { %513 = vmatprep.mubr.bf16.mxu1 %v1920_v0 }
  0x4c   : > { %1527 = vmatmul.mubr.msk.bf16.vlgmr.msra.gmra.mxu1 %vm366_vm0, %v1664_v5 }
  0x4d   : > { %523 = vmatprep.mubr.bf16.mxu1 %v1920_v0 }
  0x54   : > { %1528 = vmatmul.mubr.msk.bf16.gmra.mxu1 %vm366_vm0, %v1665_v6 }
  0x55   : > { %533 = vmatprep.mubr.bf16.mxu1 %v1920_v0 }
  0x5c   : > { %1529 = vmatmul.mubr.msk.bf16.gmra.mxu1 %vm366_vm0, %v1666_v7 }
  0xfc   : > { %v2094_v22 = vpop.f32.mrf.mxu1 }
  0xfe   : > { %v2096_v23 = vpop.f32.mrf.mxu1 }
 0x100   : > { %v2098_v24 = vpop.f32.mrf.mxu1 }
 0x102   : > { %v2100_v25 = vpop.f32.mrf.mxu1 }
 0x104   : > { %v2102_v26 = vpop.f32.mrf.mxu1 }
 0x105   : > { %2806 = vst [vmem:[#allocation11_spill] sm:$0xff] %v2102_v26 }
 0x106   : > { %v2104_v27 = vpop.f32.mrf.mxu1 }
 0x107   : > { %2807 = vst [vmem:[#allocation12_spill] sm:$0xff] %v2104_v27 }
 0x108   : > { %v2106_v28 = vpop.f32.mrf.mxu1 }
 0x109   : > { %2808 = vst [vmem:[#allocation13_spill] sm:$0xff] %v2106_v28 }
 0x10a   : > { %v2108_v29 = vpop.f32.mrf.mxu1 }
 0x10b   : > { %2809 = vst [vmem:[#allocation14_spill] sm:$0xff] %v2108_v29 }
 0x10c   : > { %v515_v30 = vpop.f32.mrf.mxu1 }
 0x10e   : > { %v517_v31 = vpop.f32.mrf.mxu1 }
 0x110   : > { %v519_v32 = vpop.f32.mrf.mxu1 }
 0x111   : > { %v1579_v33 = vpack.c.bf16 %v519_v32, %v515_v30 }
 0x112   : > { %v521_v34 = vpop.f32.mrf.mxu1 }
 0x113   : > { %624 = vxpose.xlu0.c.b16.start [1/3] (short) %v1579_v33, 128  ;;  %v1580_v35 = vpack.c.bf16 %v521_v34, %v517_v31 }
 0x114   : > { %v525_v36 = vpop.f32.mrf.mxu1 }
 0x115   : > { %640 = vxpose.xlu1.c.b16.start [1/3] (short) %v1580_v35, 128 }
 0x116   : > { %v527_v37 = vpop.f32.mrf.mxu1 }
 0x118   : > { %v529_v38 = vpop.f32.mrf.mxu1 }
 0x119   : > { %v1581_v39 = vpack.c.bf16 %v529_v38, %v525_v36 }
 0x11a   : > { %v531_v40 = vpop.f32.mrf.mxu1 }
 0x11b   : > { %v1582_v41 = vpack.c.bf16 %v531_v40, %v527_v37  ;;  %625 = vxpose.xlu0.c.b16.cont [2/3] (short) %v1581_v39, 128 }
 0x11c   : > { %v535_v42 = vpop.f32.mrf.mxu1 }
 0x11d   : > { %v1583_v43 = vpack.c.bf16 %v535_v42, %v535_v42  ;;  %641 = vxpose.xlu1.c.b16.cont [2/3] (short) %v1582_v41, 128 }
 0x11e   : > { %v537_v44 = vpop.f32.mrf.mxu1 }
 0x11f   : > { %v1584_v45 = vpack.c.bf16 %v537_v44, %v537_v44  ;;  %626 = vxpose.xlu0.c.b16.end [3/3] (short) %v1583_v43, 128 }
 0x120   : > { %v539_v46 = vpop.f32.mrf.mxu1 }
 0x121   : > { %642 = vxpose.xlu1.c.b16.end [3/3] (short) %v1584_v45, 128 }
 0x122   : > { %v540_v47 = vpop.f32.mrf.mxu1 }
 0x125   : > { %1658 = vset.pattern.permute.xlu1 %v1920_v0 }
 0x128   : > { %1657 = vset.pattern.permute.xlu0 %v1920_v0 }
 0x139   : > { %333 = vperm.xlu1 %1658, %v323_v48  }
 0x13c   : > { %328 = vperm.xlu0 %1657, %v322_v49  }
 0x13d   : > { %338 = vperm.xlu1 %1658, %v324_v50  }
 0x141   : > { %343 = vperm.xlu1 %1658, %v325_v51  }
 0x179   : > { %v632_v52 = vpop.trf.xlu0 }
 0x17a   : > { %1542 = vmatmul.mubr.msk.bf16.vlgmr.msra.gmra.mxu0 %vm656_vm2, %v632_v52 }
 0x17b   : > { %751 = vmatprep.mubr.bf16.mxu0 %v1920_v0  ;;  %v648_v54 = vpop.trf.xlu1 }
 0x17d   : > { %v633_v53 = vpop.trf.xlu0 }
 0x17f   : > { %v649_v56 = vpop.trf.xlu1 }
 0x181   : > { %v634_v55 = vpop.trf.xlu0 }
 0x182   : > { %1543 = vmatmul.mubr.msk.bf16.gmra.mxu0 %vm656_vm2, %v633_v53 }
 0x183   : > { %761 = vmatprep.mubr.bf16.mxu0 %v1920_v0  ;;  %v650_v58 = vpop.trf.xlu1 }
 0x185   : > { %v635_v57 = vpop.trf.xlu0 }
 0x187   : > { %v651_v60 = vpop.trf.xlu1 }
 0x189   : > { %v636_v59 = vpop.trf.xlu0 }
 0x18a   : > { %1544 = vmatmul.mubr.msk.bf16.gmra.mxu0 %vm656_vm2, %v634_v55 }
 0x18b   : > { %771 = vmatprep.mubr.bf16.mxu0 %v1920_v0  ;;  %v652_v61 = vpop.trf.xlu1 }
 0x18d   : > { %v637_v62 = vpop.trf.xlu0 }
 0x18f   : > { %v653_v63 = vpop.trf.xlu1 }
 0x191   : > { %v638_v1 = vpop.trf.xlu0 }
 0x192   : > { %1545 = vmatmul.mubr.msk.bf16.gmra.mxu0 %vm656_vm2, %v635_v57 }
 0x193   : > { %781 = vmatprep.mubr.bf16.mxu0 %v1920_v0  ;;  %v654_v2 = vpop.trf.xlu1 }
 0x195   : > { %v639_v4 = vpop.trf.xlu0 }
 0x197   : > { %v655_v3 = vpop.trf.xlu1 }
 0x19a   : > { %1546 = vmatmul.mubr.msk.bf16.gmra.mxu0 %vm656_vm2, %v636_v59 }
 0x19b   : > { %791 = vmatprep.mubr.bf16.mxu0 %v1920_v0 }
 0x1a2   : > { %1547 = vmatmul.mubr.msk.bf16.gmra.mxu0 %vm656_vm2, %v637_v62 }
 0x1a3   : > { %801 = vmatprep.mubr.bf16.mxu0 %v1920_v0 }
 0x1aa   : > { %1548 = vmatmul.mubr.msk.bf16.gmra.mxu0 %vm656_vm2, %v638_v1 }
 0x1ab   : > { %811 = vmatprep.mubr.bf16.mxu0 %v1920_v0 }
 0x1b2   : > { %1549 = vmatmul.mubr.msk.bf16.gmra.mxu0 %vm656_vm2, %v639_v4 }
 0x1b3   : > { %821 = vmatprep.mubr.bf16.mxu0 %v1920_v0 }
 0x1b4   : > { %v334_v5 = vpop.permute.xlu1 %333 }
 0x1b5   : > { %v2141_v7 = vadd.f32 %v2098_v24, %v334_v5  ;;  %v414_v8 = vadd.f32 %v2100_v25, %v334_v5 }
 0x1b7   : > { %v329_v6 = vpop.permute.xlu0 %328  ;;  %2810 = vst [vmem:[#allocation15_spill] sm:$0xff] %v2141_v7 }
 0x1b8   : > { %v2145_v9 = vadd.f32 %v2094_v22, %v329_v6  ;;  %v410_v10 = vadd.f32 %v2096_v23, %v329_v6 }
 0x1ba   : > { %2811 = vst [vmem:[#allocation16_spill] sm:$0xff] %v2145_v9  ;;  %v1586_v12 = vpack.c.bf16 %v414_v8, %v410_v10  ;;  %1550 = vmatmul.mubr.msk.bf16.gmra.mxu0 %vm656_vm2, %v648_v54 }
 0x1bb   : > { %831 = vmatprep.mubr.bf16.mxu0 %v1920_v0 }
 0x1bc   : > { %1330 = vmatprep.mubr.bf16.mxu1 %v1586_v12 }
 0x1c2   : > { %1551 = vmatmul.mubr.msk.bf16.gmra.mxu0 %vm656_vm2, %v649_v56 }
 0x1c3   : > { %841 = vmatprep.mubr.bf16.mxu0 %v1920_v0 }
 0x1ca   : > { %1552 = vmatmul.mubr.msk.bf16.gmra.mxu0 %vm656_vm2, %v650_v58 }
 0x1cb   : > { %851 = vmatprep.mubr.bf16.mxu0 %v1920_v0 }
 0x1d2   : > { %1553 = vmatmul.mubr.msk.bf16.gmra.mxu0 %vm656_vm2, %v651_v60 }
 0x1d3   : > { %861 = vmatprep.mubr.bf16.mxu0 %v1920_v0 }
 0x1da   : > { %1554 = vmatmul.mubr.msk.bf16.gmra.mxu0 %vm656_vm2, %v652_v61 }
 0x1db   : > { %871 = vmatprep.mubr.bf16.mxu0 %v1920_v0 }
 0x1e2   : > { %1555 = vmatmul.mubr.msk.bf16.gmra.mxu0 %vm656_vm2, %v653_v63 }
 0x1e3   : > { %881 = vmatprep.mubr.bf16.mxu0 %v1920_v0 }
 0x1ea   : > { %1556 = vmatmul.mubr.msk.bf16.gmra.mxu0 %vm656_vm2, %v654_v2 }
 0x1eb   : > { %891 = vmatprep.mubr.bf16.mxu0 %v1920_v0 }
 0x1f2   : > { %1557 = vmatmul.mubr.msk.bf16.gmra.mxu0 %vm656_vm2, %v655_v3 }
 0x23a   : > { %v2165_v13 = vpop.f32.mrf.mxu0 }
 0x23c   : > { %v2167_v14 = vpop.f32.mrf.mxu0 }
 0x23e   : > { %v2169_v15 = vpop.f32.mrf.mxu0 }
 0x240   : > { %v2171_v16 = vpop.f32.mrf.mxu0 }
 0x242   : > { %v2173_v17 = vpop.f32.mrf.mxu0 }
 0x243   : > { %v902_v2 = vmax.f32 %v2165_v13, %v2173_v17 }
 0x244   : > { %v2175_v18 = vpop.f32.mrf.mxu0 }
 0x246   : > { %v2177_v19 = vpop.f32.mrf.mxu0 }
 0x247   : > { %v903_v3 = vmax.f32 %v2169_v15, %v2177_v19 }
 0x248   : > { %v2179_v20 = vpop.f32.mrf.mxu0 }
 0x249   : > { %2812 = vst [vmem:[#allocation17_spill] sm:$0xff] %v2179_v20 }
 0x24a   : > { %v2181_v21 = vpop.f32.mrf.mxu0 }
 0x24b   : > { %v904_v5 = vmax.f32 %v902_v2, %v2181_v21 }
 0x24c   : > { %v2183_v0 = vpop.f32.mrf.mxu0 }
 0x24e   : > { %v2185_v22 = vpop.f32.mrf.mxu0 }
 0x24f   : > { %v905_v6 = vmax.f32 %v903_v3, %v2185_v22 }
 0x250   : > { %v2187_v23 = vpop.f32.mrf.mxu0 }
 0x251   : > { %2813 = vst [vmem:[#allocation18_spill] sm:$0xff] %v2187_v23 }
 0x252   : > { %v2189_v24 = vpop.f32.mrf.mxu0 }
 0x253   : > { %v906_v10 = vmax.f32 %v904_v5, %v2189_v24 }
 0x254   : > { %v2191_v25 = vpop.f32.mrf.mxu0 }
 0x256   : > { %v2193_v30 = vpop.f32.mrf.mxu0 }
 0x257   : > { %v907_v12 = vmax.f32 %v905_v6, %v2193_v30 }
 0x258   : > { %v2195_v31 = vpop.f32.mrf.mxu0 }
 0x259   : > { %2814 = vst [vmem:[#allocation19_spill] sm:$0xff] %v2195_v31 }
 0x25a   : > { %v2197_v32 = vpop.f32.mrf.mxu0 }
 0x25b   : > { %2815 = vst [vmem:[#allocation20_spill] sm:$0xff] %v2197_v32  ;;  %v908_v26 = vmax.f32 %v906_v10, %v2197_v32 }
 0x25c   : > { %v2199_v33 = vpop.f32.mrf.mxu0 }
 0x25d   : > { %2816 = vst [vmem:[#allocation21_spill] sm:$0xff] %v2199_v33 }
 0x25e   : > { %v2201_v34 = vpop.f32.mrf.mxu0 }
 0x25f   : > { %v909_v28 = vmax.f32 %v907_v12, %v2201_v34 }
 0x260   : > { %v2203_v35 = vpop.f32.mrf.mxu0 }
 0x261   : > { %2817 = vst [vmem:[#allocation22_spill] sm:$0xff] %v2203_v35 }
 0x262   : > { %v2205_v36 = vpop.f32.mrf.mxu0 }
 0x263   : > { %2818 = vst [vmem:[#allocation23_spill] sm:$0xff] %v2205_v36  ;;  %v910_v7 = vmax.f32 %v908_v26, %v2205_v36 }
 0x264   : > { %v2207_v37 = vpop.f32.mrf.mxu0 }
 0x266   : > { %v2209_v38 = vpop.f32.mrf.mxu0 }
 0x267   : > { %v911_v2 = vmax.f32 %v909_v28, %v2209_v38 }
 0x268   : > { %v2211_v39 = vpop.f32.mrf.mxu0 }
 0x26a   : > { %v2213_v40 = vpop.f32.mrf.mxu0 }
 0x26b   : > { %2819 = vst [vmem:[#allocation24_spill] sm:$0xff] %v2213_v40  ;;  %v912_v3 = vmax.f32 %v910_v7, %v2213_v40 }
 0x26c   : > { %v2215_v41 = vpop.f32.mrf.mxu0 }
 0x26e   : > { %v2217_v42 = vpop.f32.mrf.mxu0 }
 0x26f   : > { %v913_v5 = vmax.f32 %v911_v2, %v2217_v42  ;;  %v940_v2 = vmax.f32 %v2171_v16, %v2179_v20 }
 0x270   : > { %v2219_v43 = vpop.f32.mrf.mxu0 }
 0x272   : > { %v2221_v44 = vpop.f32.mrf.mxu0 }
 0x273   : > { %v914_v6 = vmax.f32 %v912_v3, %v2221_v44 }
 0x274   : > { %v2223_v45 = vpop.f32.mrf.mxu0 }
 0x276   : > { %v2225_v46 = vpop.f32.mrf.mxu0 }
 0x277   : > { %2820 = vst [vmem:[#allocation25_spill] sm:$0xff] %v2225_v46  ;;  %v915_v10 = vmax.f32 %v913_v5, %v2225_v46 }
 0x278   : > { %v2227_v47 = vpop.f32.mrf.mxu0 }
 0x27a   : > { %v2229_v48 = vpop.f32.mrf.mxu0 }
 0x27b   : > { %v916_v12 = vmax.f32 %v914_v6, %v2229_v48  ;;  %v939_v6 = vmax.f32 %v2167_v14, %v2175_v18 }
 0x27c   : > { %v2231_v49 = vpop.f32.mrf.mxu0 }
 0x27e   : > { %v2233_v50 = vpop.f32.mrf.mxu0 }
 0x27f   : > { %v917_v26 = vmax.f32 %v915_v10, %v2233_v50  ;;  %v942_v10 = vmax.f32 %v940_v2, %v2187_v23 }
 0x280   : > { %v2235_v51 = vpop.f32.mrf.mxu0 }
 0x281   : > { %v944_v20 = vmax.f32 %v942_v10, %v2195_v31 }
 0x282   : > { %v2237_v52 = vpop.f32.mrf.mxu0 }
 0x283   : > { %2821 = vst [vmem:[#allocation26_spill] sm:$0xff] %v2237_v52  ;;  %v918_v28 = vmax.f32 %v916_v12, %v2237_v52  ;;  %v941_v52 = vmax.f32 %v939_v6, %v2183_v0  ;;  %v946_v2 = vmax.f32 %v944_v20, %v2203_v35 }
 0x284   : > { %v2239_v53 = vpop.f32.mrf.mxu0 }
 0x285   : > { %v948_v10 = vmax.f32 %v946_v2, %v2211_v39 }
 0x286   : > { %v2241_v54 = vpop.f32.mrf.mxu0 }
 0x287   : > { %2822 = vst [vmem:[#allocation27_spill] sm:$0xff] %v2241_v54  ;;  %v919_v7 = vmax.f32 %v917_v26, %v2241_v54  ;;  %v950_v20 = vmax.f32 %v948_v10, %v2219_v43 }
 0x288   : > { %v2243_v55 = vpop.f32.mrf.mxu0 }
 0x28a   : > { %v2245_v56 = vpop.f32.mrf.mxu0 }
 0x28b   : > { %2823 = vst [vmem:[#allocation28_spill] sm:$0xff] %v2245_v56  ;;  %v920_v3 = vmax.f32 %v918_v28, %v2245_v56  ;;  %v943_v56 = vmax.f32 %v941_v52, %v2191_v25 }
 0x28c   : > { %v2247_v57 = vpop.f32.mrf.mxu0 }
 0x28d   : > { %v945_v6 = vmax.f32 %v943_v56, %v2199_v33  ;;  %v952_v56 = vmax.f32 %v950_v20, %v2227_v47 }
 0x28e   : > { %v2249_v58 = vpop.f32.mrf.mxu0 }
 0x28f   : > { %2824 = vst [vmem:[#allocation29_spill] sm:$0xff] %v2249_v58  ;;  %v921_v5 = vmax.f32 %v919_v7, %v2249_v58  ;;  %v947_v52 = vmax.f32 %v945_v6, %v2207_v37 }
 0x290   : > { %v2251_v59 = vpop.f32.mrf.mxu0 }
 0x291   : > { %v949_v35 = vmax.f32 %v947_v52, %v2215_v41 }
 0x292   : > { %v2253_v60 = vpop.f32.mrf.mxu0 }
 0x293   : > { %v922_v12 = vmax.f32 %v920_v3, %v2253_v60  ;;  %v951_v2 = vmax.f32 %v949_v35, %v2223_v45 }
 0x294   : > { %v2255_v61 = vpop.f32.mrf.mxu0 }
 0x296   : > { %v2257_v62 = vpop.f32.mrf.mxu0 }
 0x297   : > { %v923_v26 = vmax.f32 %v921_v5, %v2257_v62 }
 0x298   : > { %v2259_v63 = vpop.f32.mrf.mxu0 }
 0x29a   : > { %v2261_v1 = vpop.f32.mrf.mxu0 }
 0x29b   : > { %v924_v28 = vmax.f32 %v922_v12, %v2261_v1 }
 0x29c   : > { %v2267_v4 = vpop.f32.mrf.mxu0 }
 0x29e   : > { %v2271_v8 = vpop.f32.mrf.mxu0 }
 0x29f   : > { %v925_v7 = vmax.f32 %v923_v26, %v2271_v8 }
 0x2a0   : > { %v2275_v11 = vpop.f32.mrf.mxu0 }
 0x2a2   : > { %v2279_v9 = vpop.f32.mrf.mxu0 }
 0x2a3   : > { %v926_v3 = vmax.f32 %v924_v28, %v2279_v9 }
 0x2a4   : > { %v2283_v27 = vpop.f32.mrf.mxu0 }
 0x2a6   : > { %v2287_v29 = vpop.f32.mrf.mxu0 }
 0x2a7   : > { %v927_v5 = vmax.f32 %v925_v7, %v2287_v29 }
 0x2a8   : > { %v2291_v32 = vpop.f32.mrf.mxu0 }
 0x2aa   : > { %v2295_v36 = vpop.f32.mrf.mxu0 }
 0x2ab   : > { %2825 = vst [vmem:[#allocation30_spill] sm:$0xff] %v2295_v36  ;;  %v928_v12 = vmax.f32 %v926_v3, %v2295_v36  ;;  %v954_v3 = vmax.f32 %v952_v56, %v2235_v51 }
 0x2ac   : > { %v2299_v40 = vpop.f32.mrf.mxu0 }
 0x2ad   : > { %v956_v6 = vmax.f32 %v954_v3, %v2243_v55 }
 0x2ae   : > { %v2305_v46 = vpop.f32.mrf.mxu0 }
 0x2af   : > { %2826 = vst [vmem:[#allocation31_spill] sm:$0xff] %v2305_v46  ;;  %v929_v26 = vmax.f32 %v927_v5, %v2305_v46  ;;  %v953_v46 = vmax.f32 %v951_v2, %v2231_v49 }
 0x2b0   : > { %v2312_v54 = vpop.f32.mrf.mxu0 }
 0x2b1   : > { %v955_v10 = vmax.f32 %v953_v46, %v2239_v53 }
 0x2b2   : > { %v2318_v58 = vpop.f32.mrf.mxu0 }
 0x2b3   : > { %v930_v28 = vmax.f32 %v928_v12, %v2318_v58  ;;  %v958_v12 = vmax.f32 %v956_v6, %v2251_v59  ;;  %v957_v52 = vmax.f32 %v955_v10, %v2247_v57 }
 0x2b4   : > { %v2324_v23 = vpop.f32.mrf.mxu0 }
 0x2b5   : > { %v960_v20 = vmax.f32 %v958_v12, %v2259_v63  ;;  %v959_v35 = vmax.f32 %v957_v52, %v2255_v61 }
 0x2b6   : > { %v2330_v31 = vpop.f32.mrf.mxu0 }
 0x2b7   : > { %v931_v7 = vmax.f32 %v929_v26, %v2330_v31  ;;  %v961_v2 = vmax.f32 %v959_v35, %v2267_v4 }
 0x2b9   : > { %v932_v33 = vmax.f32 %v930_v28, %v931_v7  ;;  %v962_v7 = vmax.f32 %v960_v20, %v2275_v11  ;;  %v963_v46 = vmax.f32 %v961_v2, %v2283_v27 }
 0x2bb   : > { %v933_v5 = vrot.slane %v932_v33, 4  ;;  %v964_v3 = vmax.f32 %v962_v7, %v2291_v32  ;;  %v965_v10 = vmax.f32 %v963_v46, %v2299_v40 }
 0x2bd   : > { %v934_v36 = vmax.f32 %v932_v33, %v933_v5  ;;  %v2350_v33 = vpop.f32.mrf.mxu0  ;;  %v966_v5 = vmax.f32 %v964_v3, %v2312_v54  ;;  %v967_v12 = vmax.f32 %v965_v10, %v2324_v23 }
 0x2bf   : > { %v935_v26 = vrot.slane %v934_v36, 2 }
 0x2c1   : > { %v936_v28 = vmax.f32 %v934_v36, %v935_v26  ;;  %v968_v36 = vmax.f32 %v966_v5, %v2350_v33 }
 0x2c3   : > { %v937_v56 = vrot.slane %v936_v28, 1  ;;  %v969_v35 = vmax.f32 %v967_v12, %v968_v36 }
 0x2c5   : > { %v2354_v6 = vmax.f32 %v936_v28, %v937_v56  ;;  %v970_v46 = vrot.slane %v969_v35, 4 }
 0x2c7   : > { %v976_v26 = vsub.f32 %v2165_v13, %v2354_v6  ;;  %v978_v52 = vsub.f32 %v2169_v15, %v2354_v6  ;;  %v980_v20 = vsub.f32 %v2173_v17, %v2354_v6  ;;  %v982_v28 = vsub.f32 %v2177_v19, %v2354_v6 }
 0x2c8   : > { %v984_v2 = vsub.f32 %v2181_v21, %v2354_v6  ;;  %v986_v13 = vsub.f32 %v2185_v22, %v2354_v6  ;;  %v988_v17 = vsub.f32 %v2189_v24, %v2354_v6  ;;  %v971_v10 = vmax.f32 %v969_v35, %v970_v46  ;;  %v2827_v21 = vld [vmem:[#allocation20_spill] sm:$0xff] }
 0x2c9   : > { %v1040_v7 = vmul.f32 1.442695, %v976_v26  ;;  %v1044_v56 = vmul.f32 1.442695, %v978_v52  ;;  %v1048_v3 = vmul.f32 1.442695, %v980_v20  ;;  %v990_v19 = vsub.f32 %v2193_v30, %v2354_v6 }
 0x2ca   : > { %v1052_v15 = vmul.f32 1.442695, %v982_v28  ;;  %v1056_v5 = vmul.f32 1.442695, %v984_v2  ;;  %v1060_v36 = vmul.f32 1.442695, %v986_v13  ;;  %v992_v12 = vsub.f32 %v2827_v21, %v2354_v6 }
 0x2cb   : > { %1667 = vpow2.f32 %v1040_v7  ;;  %v1064_v26 = vmul.f32 1.442695, %v988_v17  ;;  %v994_v22 = vsub.f32 %v2201_v34, %v2354_v6  ;;  %v972_v52 = vrot.slane %v971_v10, 2  ;;  %v2828_v20 = vld [vmem:[#allocation23_spill] sm:$0xff]  ;;  %v2829_v30 = vld [vmem:[#allocation24_spill] sm:$0xff] }
 0x2cc   : > { %1669 = vpow2.f32 %v1044_v56  ;;  %v996_v24 = vsub.f32 %v2828_v20, %v2354_v6  ;;  %v1068_v28 = vmul.f32 1.442695, %v990_v19  ;;  %v998_v35 = vsub.f32 %v2209_v38, %v2354_v6 }
 0x2cd   : > { %1671 = vpow2.f32 %v1048_v3  ;;  %v1000_v7 = vsub.f32 %v2829_v30, %v2354_v6  ;;  %v1072_v56 = vmul.f32 1.442695, %v992_v12  ;;  %v1002_v2 = vsub.f32 %v2217_v42, %v2354_v6 }
 0x2ce   : > { %1673 = vpow2.f32 %v1052_v15  ;;  %v1076_v3 = vmul.f32 1.442695, %v994_v22  ;;  %v973_v46 = vmax.f32 %v971_v10, %v972_v52  ;;  %v1004_v13 = vsub.f32 %v2221_v44, %v2354_v6 }
 0x2cf   : > { %1675 = vpow2.f32 %v1056_v5  ;;  %v1080_v15 = vmul.f32 1.442695, %v996_v24  ;;  %v1020_v38 = vsub.f32 %v2253_v60, %v2354_v6  ;;  %v1084_v5 = vmul.f32 1.442695, %v998_v35 }
 0x2d0   : > { %1677 = vpow2.f32 %v1060_v36  ;;  %v1022_v19 = vsub.f32 %v2257_v62, %v2354_v6  ;;  %v1088_v42 = vmul.f32 1.442695, %v1000_v7  ;;  %v1024_v44 = vsub.f32 %v2261_v1, %v2354_v6 }
 0x2d1   : > { %1679 = vpow2.f32 %v1064_v26  ;;  %v1092_v21 = vmul.f32 1.442695, %v1002_v2  ;;  %v974_v12 = vrot.slane %v973_v46, 1  ;;  %v1026_v60 = vsub.f32 %v2271_v8, %v2354_v6  ;;  %v2831_v8 = vld [vmem:[#allocation25_spill] sm:$0xff] }
 0x2d2   : > { %1681 = vpow2.f32 %v1068_v28  ;;  %v1096_v26 = vmul.f32 1.442695, %v1004_v13  ;;  %v1028_v52 = vsub.f32 %v2279_v9, %v2354_v6  ;;  %v1128_v20 = vmul.f32 1.442695, %v1020_v38  ;;  %v2832_v38 = vld [vmem:[#allocation26_spill] sm:$0xff] }
 0x2d3   : > { %1683 = vpow2.f32 %v1072_v56  ;;  %v1030_v1 = vsub.f32 %v2287_v29, %v2354_v6  ;;  %v1132_v24 = vmul.f32 1.442695, %v1022_v19  ;;  %v1006_v30 = vsub.f32 %v2831_v8, %v2354_v6 }
 0x2d4   : > { %1685 = vpow2.f32 %v1076_v3  ;;  %v1136_v7 = vmul.f32 1.442695, %v1024_v44  ;;  %v2417_v56 = vmax.f32 %v973_v46, %v974_v12  ;;  %v1008_v9 = vsub.f32 %v2229_v48, %v2354_v6 }
 0x2d5   : > { %1687 = vpow2.f32 %v1080_v15  ;;  %v1140_v2 = vmul.f32 1.442695, %v1026_v60  ;;  %v1010_v13 = vsub.f32 %v2233_v50, %v2354_v6  ;;  %v1144_v15 = vmul.f32 1.442695, %v1028_v52  ;;  %v2833_v60 = vld [vmem:[#allocation27_spill] sm:$0xff] }
 0x2d6   : > { %1689 = vpow2.f32 %v1084_v5  ;;  %v1012_v5 = vsub.f32 %v2832_v38, %v2354_v6  ;;  %v1148_v46 = vmul.f32 1.442695, %v1030_v1  ;;  %v1100_v48 = vmul.f32 1.442695, %v1006_v30 }
 0x2d7   : > { %1691 = vpow2.f32 %v1088_v42  ;;  %v1104_v44 = vmul.f32 1.442695, %v1008_v9 }
 0x2d8   : > { %v2387_v34 = vpop.eup %1667  ;;  %1693 = vpow2.f32 %v1092_v21  ;;  %v979_v21 = vsub.f32 %v2171_v16, %v2417_v56  ;;  %v1112_v52 = vmul.f32 1.442695, %v1012_v5 }
 0x2d9   : > { %v2391_v17 = vpop.eup %1669  ;;  %1695 = vpow2.f32 %v1096_v26  ;;  %v1014_v26 = vsub.f32 %v2833_v60, %v2354_v6 }
 0x2da   : > { %2830 = vst [vmem:[#allocation20_spill] sm:$0xff] %v2391_v17  ;;  %v1168_v10 = vadd.f32 %v2391_v17, %v2387_v34  ;;  %v2399_v36 = vpop.eup %1671  ;;  %1697 = vpow2.f32 %v1128_v20 }
 0x2db   : > { %v2406_v22 = vpop.eup %1673  ;;  %1699 = vpow2.f32 %v1132_v24  ;;  %v2834_v24 = vld [vmem:[#allocation28_spill] sm:$0xff] }
 0x2dc   : > { %v1169_v62 = vadd.f32 %v2399_v36, %v1168_v10  ;;  %v2413_v35 = vpop.eup %1675  ;;  %1701 = vpow2.f32 %v1136_v7  ;;  %v977_v10 = vsub.f32 %v2167_v14, %v2417_v56  ;;  %v981_v14 = vsub.f32 %v2175_v18, %v2417_v56  ;;  %v2835_v7 = vld [vmem:[#allocation17_spill] sm:$0xff] }
 0x2dd   : > { %v2422_v3 = vpop.eup %1677  ;;  %1703 = vpow2.f32 %v1140_v2  ;;  %v983_v9 = vsub.f32 %v2835_v7, %v2417_v56  ;;  %v1046_v2 = vmul.f32 1.442695, %v979_v21  ;;  %v2836_v18 = vld [vmem:[#allocation29_spill] sm:$0xff] }
 0x2de   : > { %v1170_v28 = vadd.f32 %v2406_v22, %v1169_v62  ;;  %v2429_v42 = vpop.eup %1679  ;;  %v1108_v62 = vmul.f32 1.442695, %v1010_v13  ;;  %1705 = vpow2.f32 %v1144_v15  ;;  %v1042_v16 = vmul.f32 1.442695, %v977_v10 }
 0x2df   : > { %v2436_v12 = vpop.eup %1681  ;;  %1707 = vpow2.f32 %v1148_v46  ;;  %v1018_v13 = vsub.f32 %v2836_v18, %v2354_v6  ;;  %v1116_v15 = vmul.f32 1.442695, %v1014_v26  ;;  %v985_v46 = vsub.f32 %v2183_v0, %v2417_v56 }
 0x2e0   : > { %v1171_v29 = vadd.f32 %v2413_v35, %v1170_v28  ;;  %v2443_v1 = vpop.eup %1683  ;;  %v1016_v28 = vsub.f32 %v2834_v24, %v2354_v6  ;;  %1709 = vpow2.f32 %v1100_v48  ;;  %v989_v26 = vsub.f32 %v2191_v25, %v2417_v56 }
 0x2e1   : > { %v2447_v8 = vpop.eup %1685  ;;  %1711 = vpow2.f32 %v1104_v44  ;;  %v2837_v44 = vld [vmem:[#allocation18_spill] sm:$0xff]  ;;  %v1124_v0 = vmul.f32 1.442695, %v1018_v13  ;;  %v1058_v7 = vmul.f32 1.442695, %v985_v46  ;;  %v1001_v25 = vsub.f32 %v2215_v41, %v2417_v56 }
 0x2e2   : > { %v1172_v19 = vadd.f32 %v2422_v3, %v1171_v29  ;;  %v2452_v29 = vpop.eup %1687  ;;  %1713 = vpow2.f32 %v1108_v62  ;;  %v1120_v10 = vmul.f32 1.442695, %v1016_v28  ;;  %v1054_v62 = vmul.f32 1.442695, %v983_v9 }
 0x2e3   : > { %v2456_v38 = vpop.eup %1689  ;;  %1715 = vpow2.f32 %v1112_v52  ;;  %v1003_v9 = vsub.f32 %v2219_v43, %v2417_v56  ;;  %v1007_v41 = vsub.f32 %v2227_v47, %v2417_v56 }
 0x2e4   : > { %v1173_v50 = vadd.f32 %v2429_v42, %v1172_v19  ;;  %v1050_v19 = vmul.f32 1.442695, %v981_v14  ;;  %v2461_v48 = vpop.eup %1691  ;;  %1717 = vpow2.f32 %v1042_v16  ;;  %v2839_v16 = vld [vmem:[#allocation21_spill] sm:$0xff] }
 0x2e5   : > { %v2465_v21 = vpop.eup %1693  ;;  %1719 = vpow2.f32 %v1046_v2 }
 0x2e6   : > { %v1174_v20 = vadd.f32 %v2436_v12, %v1173_v50  ;;  %v987_v50 = vsub.f32 %v2837_v44, %v2417_v56  ;;  %v2470_v52 = vpop.eup %1695  ;;  %1721 = vpow2.f32 %v1116_v15 }
 0x2e7   : > { %v2474_v24 = vpop.eup %1697  ;;  %1723 = vpow2.f32 %v1050_v19 }
 0x2e8   : > { %v1175_v30 = vadd.f32 %v2443_v1, %v1174_v20  ;;  %v2838_v20 = vld [vmem:[#allocation19_spill] sm:$0xff]  ;;  %v2479_v18 = vpop.eup %1699  ;;  %1725 = vpow2.f32 %v1120_v10  ;;  %v1062_v2 = vmul.f32 1.442695, %v987_v50  ;;  %v1005_v10 = vsub.f32 %v2223_v45, %v2417_v56 }
 0x2e9   : > { %v991_v14 = vsub.f32 %v2838_v20, %v2417_v56  ;;  %v2485_v13 = vpop.eup %1701  ;;  %1727 = vpow2.f32 %v1054_v62  ;;  %v1090_v45 = vmul.f32 1.442695, %v1001_v25 }
 0x2ea   : > { %v1176_v5 = vadd.f32 %v2447_v8, %v1175_v30  ;;  %v993_v30 = vsub.f32 %v2839_v16, %v2417_v56  ;;  %v2490_v46 = vpop.eup %1703  ;;  %1729 = vpow2.f32 %v1124_v0  ;;  %v2840_v0 = vld [vmem:[#allocation22_spill] sm:$0xff] }
 0x2eb   : > { %v1070_v43 = vmul.f32 1.442695, %v991_v14  ;;  %v2496_v44 = vpop.eup %1705  ;;  %1731 = vpow2.f32 %v1058_v7  ;;  %v995_v20 = vsub.f32 %v2840_v0, %v2417_v56  ;;  %v1094_v14 = vmul.f32 1.442695, %v1003_v9 }
 0x2ec   : > { %v1177_v60 = vadd.f32 %v2452_v29, %v1176_v5  ;;  %v1066_v5 = vmul.f32 1.442695, %v989_v26  ;;  %v2501_v62 = vpop.eup %1707  ;;  %1733 = vpow2.f32 %v1062_v2  ;;  %v997_v7 = vsub.f32 %v2207_v37, %v2417_v56 }
 0x2ed   : > { %v999_v2 = vsub.f32 %v2211_v39, %v2417_v56  ;;  %v1078_v26 = vmul.f32 1.442695, %v995_v20  ;;  %v2846_v20 = vld [vmem:[#allocation31_spill] sm:$0xff] }
 0x2ee   : > { %v1178_v28 = vadd.f32 %v2456_v38, %v1177_v60  ;;  %v1074_v60 = vmul.f32 1.442695, %v993_v30  ;;  %1735 = vpow2.f32 %v1066_v5  ;;  %v1102_v5 = vmul.f32 1.442695, %v1007_v41 }
 0x2ef   : > { %1737 = vpow2.f32 %v1070_v43  ;;  %v1086_v41 = vmul.f32 1.442695, %v999_v2 }
 0x2f0   : > { %v1179_v15 = vadd.f32 %v2461_v48, %v1178_v28  ;;  %v2505_v28 = vpop.eup %1709  ;;  %1739 = vpow2.f32 %v1074_v60 }
 0x2f1   : > { %v2510_v30 = vpop.eup %1711  ;;  %1741 = vpow2.f32 %v1090_v45 }
 0x2f2   : > { %v1180_v50 = vadd.f32 %v2465_v21, %v1179_v15  ;;  %2841 = vst [vmem:[#allocation23_spill] sm:$0xff] %v2510_v30  ;;  %v1098_v15 = vmul.f32 1.442695, %v1005_v10  ;;  %v2514_v19 = vpop.eup %1713  ;;  %1743 = vpow2.f32 %v1094_v14  ;;  %v2844_v10 = vld [vmem:[#allocation30_spill] sm:$0xff]  ;;  %v1034_v14 = vsub.f32 %v2846_v20, %v2354_v6 }
 0x2f3   : > { %2842 = vst [vmem:[#allocation24_spill] sm:$0xff] %v2514_v19  ;;  %v2519_v9 = vpop.eup %1715  ;;  %v1032_v43 = vsub.f32 %v2844_v10, %v2354_v6  ;;  %v1029_v10 = vsub.f32 %v2283_v27, %v2417_v56 }
 0x2f4   : > { %v1181_v47 = vadd.f32 %v2470_v52, %v1180_v50  ;;  %2843 = vst [vmem:[#allocation25_spill] sm:$0xff] %v2519_v9  ;;  %v2521_v50 = vpop.eup %1717  ;;  %1745 = vpow2.f32 %v1098_v15 }
 0x2f5   : > { %v2524_v37 = vpop.eup %1719  ;;  %1747 = vpow2.f32 %v1102_v5  ;;  %v1152_v5 = vmul.f32 1.442695, %v1032_v43  ;;  %v1038_v43 = vsub.f32 %v2330_v31, %v2354_v6 }
 0x2f6   : > { %v1182_v25 = vadd.f32 %v2505_v28, %v1181_v47  ;;  %v1082_v47 = vmul.f32 1.442695, %v997_v7  ;;  %v2528_v16 = vpop.eup %1721  ;;  %v1205_v60 = vadd.f32 %v2524_v37, %v2521_v50  ;;  %v1036_v7 = vsub.f32 %v2318_v58, %v2354_v6 }
 0x2f7   : > { %2845 = vst [vmem:[#allocation26_spill] sm:$0xff] %v2528_v16  ;;  %v2533_v45 = vpop.eup %1723  ;;  %1749 = vpow2.f32 %v1078_v26  ;;  %v1011_v6 = vsub.f32 %v2235_v51, %v2417_v56 }
 0x2f8   : > { %v1183_v0 = vadd.f32 %v2510_v30, %v1182_v25  ;;  %v2537_v25 = vpop.eup %1725  ;;  %1751 = vpow2.f32 %v1082_v47  ;;  %v1031_v30 = vsub.f32 %v2291_v32, %v2417_v56  ;;  %v1160_v27 = vmul.f32 1.442695, %v1036_v7 }
 0x2f9   : > { %v2543_v2 = vpop.eup %1727  ;;  %1753 = vpow2.f32 %v1086_v41  ;;  %v1009_v32 = vsub.f32 %v2231_v49, %v2417_v56  ;;  %v1146_v41 = vmul.f32 1.442695, %v1029_v10 }
 0x2fa   : > { %v1184_v39 = vadd.f32 %v2514_v19, %v1183_v0  ;;  %v1206_v0 = vadd.f32 %v2533_v45, %v1205_v60  ;;  %v2547_v19 = vpop.eup %1729  ;;  %1755 = vpow2.f32 %v1152_v5  ;;  %v1013_v5 = vsub.f32 %v2239_v53, %v2417_v56 }
 0x2fb   : > { %2847 = vst [vmem:[#allocation27_spill] sm:$0xff] %v2547_v19  ;;  %v2553_v26 = vpop.eup %1731 }
 0x2fc   : > { %v1185_v15 = vadd.f32 %v2519_v9, %v1184_v39  ;;  %v1207_v58 = vadd.f32 %v2543_v2, %v1206_v0  ;;  %v1156_v39 = vmul.f32 1.442695, %v1034_v14  ;;  %v2555_v60 = vpop.eup %1733 }
 0x2fe   : > { %v1186_v20 = vadd.f32 %v2528_v16, %v1185_v15  ;;  %v1208_v9 = vadd.f32 %v2553_v26, %v1207_v58  ;;  %v2561_v15 = vpop.eup %1735  ;;  %v1150_v16 = vmul.f32 1.442695, %v1031_v30  ;;  %1757 = vpow2.f32 %v1156_v39 }
 0x2ff   : > { %v2565_v0 = vpop.eup %1737  ;;  %1759 = vpow2.f32 %v1160_v27  ;;  %v1106_v39 = vmul.f32 1.442695, %v1009_v32  ;;  %v1110_v27 = vmul.f32 1.442695, %v1011_v6  ;;  %v1114_v32 = vmul.f32 1.442695, %v1013_v5 }
 0x300   : > { %v1187_v47 = vadd.f32 %v2537_v25, %v1186_v20  ;;  %v1209_v17 = vadd.f32 %v2555_v60, %v1208_v9  ;;  %v2569_v31 = vpop.eup %1739  ;;  %v1164_v20 = vmul.f32 1.442695, %v1038_v43  ;;  %1761 = vpow2.f32 %v1146_v41 }
 0x301   : > { %v1742_v7 = vpop.eup %1741  ;;  %1763 = vpow2.f32 %v1150_v16  ;;  %v1015_v43 = vsub.f32 %v2243_v55, %v2417_v56  ;;  %v1017_v16 = vsub.f32 %v2247_v57, %v2417_v56 }
 0x302   : > { %v1188_v14 = vadd.f32 %v2547_v19, %v1187_v47  ;;  %v1210_v10 = vadd.f32 %v2561_v15, %v1209_v17  ;;  %v1744_v58 = vpop.eup %1743  ;;  %1765 = vpow2.f32 %v1164_v20  ;;  %v1021_v19 = vsub.f32 %v2255_v61, %v2417_v56 }
 0x303   : > { %v2577_v30 = vpop.eup %1745  ;;  %1767 = vpow2.f32 %v1106_v39  ;;  %v1259_v20 = vpack.c.bf16 %v1744_v58, %v1742_v7  ;;  %v1118_v5 = vmul.f32 1.442695, %v1015_v43  ;;  %v1039_v39 = vsub.f32 %v2350_v33, %v2417_v56 }
 0x304   : > { %v1189_v49 = vadd.f32 %v2474_v24, %v1188_v14  ;;  %v1211_v51 = vadd.f32 %v2565_v0, %v1210_v10  ;;  %v2581_v47 = vpop.eup %1747  ;;  %1769 = vpow2.f32 %v1110_v27  ;;  %v1023_v43 = vsub.f32 %v2259_v63, %v2417_v56 }
 0x305   : > { %v1261_v41 = vpack.c.bf16 %v2581_v47, %v2577_v30  ;;  %v1750_v14 = vpop.eup %1749  ;;  %1771 = vpow2.f32 %v1114_v32  ;;  %v1033_v33 = vsub.f32 %v2299_v40, %v2417_v56  ;;  %v1035_v63 = vsub.f32 %v2312_v54, %v2417_v56 }
 0x306   : > { %v1190_v9 = vadd.f32 %v2479_v18, %v1189_v49  ;;  %v1212_v53 = vadd.f32 %v2569_v31, %v1211_v51  ;;  %v1260_v49 = vpack.c.bf16 %v2505_v28, %v2470_v52  ;;  %v1752_v10 = vpop.eup %1751  ;;  %v1019_v51 = vsub.f32 %v2251_v59, %v2417_v56 }
 0x307   : > { %1298 = vmatprep.subr.bf16.mxu1 %v1261_v41  ;;  %v1037_v28 = vsub.f32 %v2324_v23, %v2417_v56  ;;  %v1258_v59 = vpack.c.bf16 %v2465_v21, %v2461_v48  ;;  %v1025_v23 = vsub.f32 %v2267_v4, %v2417_v56  ;;  %1773 = vpow2.f32 %v1118_v5 }
 0x308   : > { %v1191_v17 = vadd.f32 %v2485_v13, %v1190_v9  ;;  %v1213_v6 = vadd.f32 %v1750_v14, %v1212_v53  ;;  %v1754_v9 = vpop.eup %1753  ;;  %1299 = vmatpush1.bf16.msra.mxu1 %v1260_v49  ;;  %v1126_v27 = vmul.f32 1.442695, %v1019_v51  ;;  %v1130_v21 = vmul.f32 1.442695, %v1021_v19 }
 0x309   : > { %1300 = vmatprep.subr.bf16.mxu1 %v1259_v20  ;;  %v1257_v41 = vpack.c.bf16 %v1754_v9, %v1752_v10  ;;  %v2606_v49 = vpop.eup %1755  ;;  %v1166_v4 = vmul.f32 1.442695, %v1039_v39  ;;  %v1256_v40 = vpack.c.bf16 %v2456_v38, %v2452_v29  ;;  %v1255_v19 = vpack.c.bf16 %v1750_v14, %v2569_v31 }
 0x30a   : > { %v1192_v55 = vadd.f32 %v2490_v46, %v1191_v17  ;;  %v1214_v52 = vadd.f32 %v1752_v10, %v1213_v6  ;;  %v1122_v17 = vmul.f32 1.442695, %v1017_v16  ;;  %v1027_v51 = vsub.f32 %v2275_v11, %v2417_v56 }
 0x30b   : > { %v2614_v16 = vpop.eup %1757  ;;  %v1134_v54 = vmul.f32 1.442695, %v1023_v43  ;;  %v1154_v31 = vmul.f32 1.442695, %v1033_v33  ;;  %v1158_v14 = vmul.f32 1.442695, %v1035_v63  ;;  %v1254_v11 = vpack.c.bf16 %v2447_v8, %v2443_v1 }
 0x30c   : > { %v1193_v57 = vadd.f32 %v2496_v44, %v1192_v55  ;;  %v1215_v61 = vadd.f32 %v1754_v9, %v1214_v52  ;;  %1301 = vmatpush1.bf16.msra.mxu1 %v1258_v59  ;;  %v2617_v10 = vpop.eup %1759  ;;  %v1162_v55 = vmul.f32 1.442695, %v1037_v28  ;;  %1775 = vpow2.f32 %v1122_v17 }
 0x30d   : > { %1302 = vmatprep.subr.bf16.mxu1 %v1257_v41  ;;  %v2623_v6 = vpop.eup %1761  ;;  %1777 = vpow2.f32 %v1126_v27  ;;  %v1253_v28 = vpack.c.bf16 %v2565_v0, %v2561_v15  ;;  %v1142_v39 = vmul.f32 1.442695, %v1027_v51  ;;  %v1252_v1 = vpack.c.bf16 %v2436_v12, %v2429_v42 }
 0x30e   : > { %v1194_v53 = vadd.f32 %v2501_v62, %v1193_v57  ;;  %v1216_v32 = vadd.f32 %v1742_v7, %v1215_v61  ;;  %v2627_v7 = vpop.eup %1763  ;;  %v1138_v57 = vmul.f32 1.442695, %v1025_v23  ;;  %1779 = vpow2.f32 %v1130_v21 }
 0x30f   : > { %v1273_v38 = vpack.c.bf16 %v2627_v7, %v2623_v6  ;;  %1781 = vpow2.f32 %v1162_v55  ;;  %v1251_v15 = vpack.c.bf16 %v2555_v60, %v2553_v26  ;;  %v1250_v61 = vpack.c.bf16 %v2422_v3, %v2413_v35 }
 0x310   : > { %v1195_v48 = vadd.f32 %v2606_v49, %v1194_v53  ;;  %v1217_v9 = vadd.f32 %v1744_v58, %v1216_v32  ;;  %1303 = vmatpush1.bf16.msra.mxu1 %v1256_v40  ;;  %v1766_v58 = vpop.eup %1765  ;;  %1783 = vpow2.f32 %v1166_v4  ;;  %v1249_v43 = vpack.c.bf16 %v2543_v2, %v2533_v45  ;;  %v2848_v2 = vld [vmem:[#allocation20_spill] sm:$0xff] }
 0x311   : > { %1304 = vmatprep.subr.bf16.mxu1 %v1255_v19  ;;  %1785 = vpow2.f32 %v1134_v54  ;;  %v1248_v26 = vpack.c.bf16 %v2406_v22, %v2399_v36  ;;  %v1246_v32 = vpack.c.bf16 %v2848_v2, %v2387_v34  ;;  %v1274_v19 = vpack.c.bf16 %v2614_v16, %v2606_v49 }
 0x312   : > { %v1196_v20 = vadd.f32 %v2614_v16, %v1195_v48  ;;  %v1218_v29 = vadd.f32 %v2577_v30, %v1217_v9  ;;  %v2642_v30 = vpop.eup %1767  ;;  %1787 = vpow2.f32 %v1138_v57  ;;  %v1247_v48 = vpack.c.bf16 %v2524_v37, %v2521_v50 }
 0x313   : > { %v2645_v59 = vpop.eup %1769  ;;  %1789 = vpow2.f32 %v1154_v31  ;;  %v2850_v49 = vpack.c.bf16 %v2490_v46, %v2485_v13  ;;  %v2853_v31 = vld [vmem:[#allocation25_spill] sm:$0xff]  ;;  %v2855_v46 = vld [vmem:[#allocation14_spill] sm:$0xff]  ;;  %v1362_v2 = vstv %s1353_s18 }
 0x314   : > { %v1197_v5 = vadd.f32 %v2617_v10, %v1196_v20  ;;  %v1219_v52 = vadd.f32 %v2581_v47, %v1218_v29  ;;  %1305 = vmatpush1.bf16.msra.mxu1 %v1254_v11  ;;  %1791 = vpow2.f32 %v1158_v14  ;;  %v1772_v0 = vpop.eup %1771  ;;  %v1276_v20 = vpack.c.bf16 %v1766_v58, %v2617_v10  ;;  %v2854_v14 = vld [vmem:[#allocation26_spill] sm:$0xff] }
 0x315   : > { %1306 = vmatprep.subr.bf16.mxu1 %v1253_v28  ;;  %1793 = vpow2.f32 %v1142_v39  ;;  %v1774_v53 = vpop.eup %1773  ;;  %v2849_v10 = vpack.c.bf16 %v2501_v62, %v2496_v44  ;;  %v1264_v11 = vpack.c.bf16 %v2854_v14, %v2853_v31  ;;  %v1263_v13 = vpack.c.bf16 %v2645_v59, %v2642_v30  ;;  %v2857_v28 = vld [vmem:[#allocation24_spill] sm:$0xff] }
 0x316   : > { %v2637_v56 = vadd.f32 %v1766_v58, %v1197_v5  ;;  %v1220_v17 = vadd.f32 %v2642_v30, %v1219_v52  ;;  %v1265_v62 = vpack.c.bf16 %v1774_v53, %v1772_v0 }
 0x318   : > { %v1221_v8 = vadd.f32 %v2645_v59, %v1220_v17  ;;  %1307 = vmatpush1.bf16.msra.mxu1 %v1252_v1  ;;  %v2858_v17 = vld [vmem:[#allocation12_spill] sm:$0xff] }
 0x319   : > { %1308 = vmatprep.subr.bf16.mxu1 %v1251_v15  ;;  %v1776_v42 = vpop.eup %1775  ;;  %v2860_v15 = vld [vmem:[#allocation16_spill] sm:$0xff] }
 0x31a   : > { %v1222_v47 = vadd.f32 %v1772_v0, %v1221_v8  ;;  %v1778_v12 = vpop.eup %1777  ;;  %v2859_v8 = vld [vmem:[#allocation15_spill] sm:$0xff] }
 0x31b   : > { %v1780_v33 = vpop.eup %1779  ;;  %v1267_v16 = vpack.c.bf16 %v1778_v12, %v1776_v42  ;;  %v2861_v0 = vpack.c.bf16 %v2859_v8, %v2860_v15 }
 0x31c   : > { %v1223_v41 = vadd.f32 %v1774_v53, %v1222_v47  ;;  %1309 = vmatpush1.bf16.msra.mxu1 %v1250_v61  ;;  %v1782_v60 = vpop.eup %1781  ;;  %v2862_v47 = vld [vmem:[#allocation13_spill] sm:$0xff]  ;;  %v2863_v61 = vld [vmem:[#allocation11_spill] sm:$0xff] }
 0x31d   : > { %1310 = vmatprep.subr.bf16.mxu1 %v1249_v43  ;;  %v1784_v21 = vpop.eup %1783 }
 0x31e   : > { %v1224_v23 = vadd.f32 %v1776_v42, %v1223_v41  ;;  %v1786_v35 = vpop.eup %1785  ;;  %v1277_v4 = vpack.c.bf16 %v1784_v21, %v1782_v60  ;;  %v1199_v41 = vrot.slane %v2637_v56, 4 }
 0x31f   : > { %v1788_v45 = vpop.eup %1787  ;;  %v1269_v58 = vpack.c.bf16 %v1786_v35, %v1780_v33 }
 0x320   : > { %v1225_v27 = vadd.f32 %v1778_v12, %v1224_v23  ;;  %1311 = vmatpush1.bf16.msra.mxu1 %v1248_v26  ;;  %v1790_v63 = vpop.eup %1789  ;;  %v1200_v42 = vadd.f32 %v1199_v41, %v2637_v56 }
 0x321   : > { %1312 = vmatprep.subr.bf16.mxu1 %v1247_v48  ;;  %v1792_v40 = vpop.eup %1791 }
 0x322   : > { %v1226_v3 = vadd.f32 %v1780_v33, %v1225_v27  ;;  %v1794_v22 = vpop.eup %1793  ;;  %v1275_v37 = vpack.c.bf16 %v1792_v40, %v1790_v63  ;;  %v1201_v23 = vrot.slane %v1200_v42, 2 }
 0x323   : > { %v1271_v57 = vpack.c.bf16 %v1794_v22, %v1788_v45 }
 0x324   : > { %v1227_v55 = vadd.f32 %v1786_v35, %v1226_v3  ;;  %1313 = vmatpush1.bf16.msra.mxu1 %v1246_v32  ;;  %v1202_v26 = vadd.f32 %v1201_v23, %v1200_v42 }
 0x325   : > { %1314 = vmatprep.subr.bf16.mxu1 %v1277_v4 }
 0x326   : > { %v1228_v36 = vadd.f32 %v1788_v45, %v1227_v55  ;;  %v1203_v27 = vrot.slane %v1202_v26, 1 }
 0x328   : > { %v1229_v50 = vadd.f32 %v1794_v22, %v1228_v36  ;;  %1315 = vmatpush2.bf16.msra.mxu1 %v1276_v20  ;;  %v1799_v36 = vld [vmem:[%s2053_s20] sm:$0xff] }
 0x329   : > { %1316 = vmatprep.subr.bf16.mxu1 %v1275_v37 }
 0x32a   : > { %v1230_v9 = vadd.f32 %v2623_v6, %v1229_v50  ;;  %v2851_v6 = vpack.c.bf16 %v2479_v18, %v2474_v24  ;;  %v2856_v18 = vld [vmem:[#allocation23_spill] sm:$0xff] }
 0x32b   : > { %v1262_v39 = vpack.c.bf16 %v2857_v28, %v2856_v18  ;;  %v1805_v18 = vld [vmem:[%s2053_s20 + $0x30] sm:$0xff] }
 0x32c   : > { %v1231_v34 = vadd.f32 %v2627_v7, %v1230_v9  ;;  %1317 = vmatpush2.bf16.msra.mxu1 %v1274_v19  ;;  %v339_v7 = vpop.permute.xlu1 %338  ;;  %v1800_v9 = vld [vmem:[%s2053_s20 + $0x8] sm:$0xff] }
 0x32d   : > { %1318 = vmatprep.subr.bf16.mxu1 %v1273_v38  ;;  %v2852_v38 = vld [vmem:[#allocation27_spill] sm:$0xff]  ;;  %v420_v1 = vadd.f32 %v2858_v17, %v339_v7  ;;  %v418_v30 = vadd.f32 %v2863_v61, %v339_v7  ;;  %v1806_v17 = vld [vmem:[%s2053_s20 + $0x38] sm:$0xff] }
 0x32e   : > { %v1232_v51 = vadd.f32 %v1790_v63, %v1231_v34  ;;  %v1266_v44 = vpack.c.bf16 %v2852_v38, %v2537_v25 }
 0x330   : > { %v1233_v54 = vadd.f32 %v1792_v40, %v1232_v51  ;;  %1319 = vmatpush2.bf16.msra.mxu1 %v2849_v10  ;;  %v344_v52 = vpop.permute.xlu1 %343 }
 0x331   : > { %1320 = vmatprep.subr.bf16.mxu1 %v1271_v57  ;;  %v424_v24 = vadd.f32 %v2855_v46, %v344_v52  ;;  %v422_v53 = vadd.f32 %v2862_v47, %v344_v52  ;;  %v1801_v57 = vld [vmem:[%s2053_s20 + $0x10] sm:$0xff]  ;;  %v1804_v52 = vld [vmem:[%s2053_s20 + $0x28] sm:$0xff] }
 0x332   : > { %v1234_v5 = vadd.f32 %v1782_v60, %v1233_v54 }
 0x333   : > { %v1588_v25 = vpack.c.bf16 %v424_v24, %v420_v1  ;;  %v1587_v59 = vpack.c.bf16 %v422_v53, %v418_v30 }
 0x334   : > { %v1235_v29 = vadd.f32 %v1784_v21, %v1234_v5  ;;  %1321 = vmatpush2.bf16.msra.mxu1 %v2850_v49  ;;  %v1204_v21 = vadd.f32 %v1203_v27, %v1202_v26  ;;  %v1802_v49 = vld [vmem:[%s2053_s20 + $0x18] sm:$0xff] }
 0x335   : > { %1322 = vmatprep.subr.bf16.mxu1 %v1269_v58 }
 0x336   : > { %v1236_v43 = vrot.slane %v1235_v29, 4  ;;  %1795 = vrcp.f32 %v1204_v21 }
 0x338   : > { %1323 = vmatpush2.bf16.msra.mxu1 %v2851_v6  ;;  %v1237_v12 = vadd.f32 %v1236_v43, %v1235_v29 }
 0x339   : > { %1324 = vmatprep.subr.bf16.mxu1 %v1267_v16 }
 0x33a   : > { %v1238_v33 = vrot.slane %v1237_v12, 2 }
 0x33c   : > { %1325 = vmatpush2.bf16.msra.mxu1 %v1266_v44  ;;  %v1239_v60 = vadd.f32 %v1238_v33, %v1237_v12  ;;  %v1803_v44 = vld [vmem:[%s2053_s20 + $0x20] sm:$0xff] }
 0x33d   : > { %1326 = vmatprep.subr.bf16.mxu1 %v1265_v62 }
 0x33e   : > { %v1240_v48 = vrot.slane %v1239_v60, 1 }
 0x340   : > { %1327 = vmatpush2.bf16.msra.mxu1 %v1264_v11  ;;  %v1241_v35 = vadd.f32 %v1240_v48, %v1239_v60 }
 0x341   : > { %1328 = vmatprep.subr.bf16.mxu1 %v1263_v13 }
 0x342   : > { %1797 = vrcp.f32 %v1241_v35 }
 0x343   : > { %v1796_v3 = vpop.eup %1795 }
 0x344   : > { %1329 = vmatpush2.bf16.msra.mxu1 %v1262_v39 }
 0x347   : > { %1331 = vmatmul.mubr.bf16.vlgmr.msra.gmra.mxu1 %v2861_v0 }
 0x348   : > { %1340 = vmatprep.mubr.bf16.mxu1 %v1588_v25 }
 0x34f   : > { %1341 = vmatmul.mubr.bf16.gmra.mxu1 %v1587_v59  ;;  %v1798_v56 = vpop.eup %1797 }
 0x407   : > { %v1332_v45 = vpop.f32.mrf.mxu1 }
 0x408   : > { %v1354_v32 = vmul.f32 %v1796_v3, %v1332_v45 }
 0x409   : > { %v1334_v63 = vpop.f32.mrf.mxu1 }
 0x40a   : > { %v1363_v55 = vmul.f32 %v1362_v2, %v1354_v32  ;;  %v1355_v4 = vmul.f32 %v1798_v56, %v1334_v63 }
 0x40b   : > { %v1336_v40 = vpop.f32.mrf.mxu1 }
 0x40c   : > { %v1371_v22 = vadd.f32 %v1799_v36, %v1363_v55  ;;  %v1364_v20 = vmul.f32 %v1362_v2, %v1355_v4  ;;  %v1356_v50 = vmul.f32 %v1796_v3, %v1336_v40 }
 0x40d   : > { %v1338_v37 = vpop.f32.mrf.mxu1 }
 0x40e   : > { %1379 = vst [vmem:[%s2699_s19] sm:$0xff] %v1371_v22  ;;  %v1372_v19 = vadd.f32 %v1800_v9, %v1364_v20  ;;  %v1365_v34 = vmul.f32 %v1362_v2, %v1356_v50  ;;  %v1357_v51 = vmul.f32 %v1798_v56, %v1338_v37 }
 0x40f   : > { %v1342_v54 = vpop.f32.mrf.mxu1 }
 0x410   : > { %1380 = vst [vmem:[%s2699_s19 + $0x8] sm:$0xff] %v1372_v19  ;;  %v1373_v10 = vadd.f32 %v1801_v57, %v1365_v34  ;;  %v1366_v5 = vmul.f32 %v1362_v2, %v1357_v51  ;;  %v1358_v29 = vmul.f32 %v1796_v3, %v1342_v54 }
 0x411   : > { %v1344_v58 = vpop.f32.mrf.mxu1 }
 0x412   : > { %1381 = vst [vmem:[%s2699_s19 + $0x10] sm:$0xff] %v1373_v10  ;;  %v1374_v16 = vadd.f32 %v1802_v49, %v1366_v5  ;;  %v1367_v6 = vmul.f32 %v1362_v2, %v1358_v29  ;;  %v1359_v7 = vmul.f32 %v1798_v56, %v1344_v58 }
 0x413   : > { %v1346_v38 = vpop.f32.mrf.mxu1 }
 0x414   : > { %1382 = vst [vmem:[%s2699_s19 + $0x18] sm:$0xff] %v1374_v16  ;;  %v1375_v62 = vadd.f32 %v1803_v44, %v1367_v6  ;;  %v1368_v31 = vmul.f32 %v1362_v2, %v1359_v7  ;;  %v1360_v14 = vmul.f32 %v1796_v3, %v1346_v38 }
 0x415   : > { %v1348_v11 = vpop.f32.mrf.mxu1 }
 0x416   : > { %1383 = vst [vmem:[%s2699_s19 + $0x20] sm:$0xff] %v1375_v62  ;;  %v1376_v13 = vadd.f32 %v1804_v52, %v1368_v31  ;;  %v1369_v46 = vmul.f32 %v1362_v2, %v1360_v14  ;;  %v1361_v24 = vmul.f32 %v1798_v56, %v1348_v11 }
 0x418   : > { %1384 = vst [vmem:[%s2699_s19 + $0x28] sm:$0xff] %v1376_v13  ;;  %v1377_v28 = vadd.f32 %v1805_v18, %v1369_v46  ;;  %v1370_v39 = vmul.f32 %v1362_v2, %v1361_v24 }
 0x41a   : > { %1385 = vst [vmem:[%s2699_s19 + $0x30] sm:$0xff] %v1377_v28  ;;  %v1378_v1 = vadd.f32 %v1806_v17, %v1370_v39 }
 0x41c   : > { %1386 = vst [vmem:[%s2699_s19 + $0x38] sm:$0xff] %v1378_v1 }
 0x41d   : > { %1848 = shalt.err (!%p1845_p7)
}
 0x41e   : > { %s1849_s20 = scalar_lea.hbm %s2718_s29, 1024  ;;  %s1853_s18 = scalar_lea.hbm %s2777_s6, 2048 }
 0x41f   : > { %p1850_p10 = scmp.ne.s32.totalorder %s2718_s29, %s1849_s20  ;;  %p1854_p2 = scmp.lt.s32.totalorder %s2718_s29, %s2777_s6 }
 0x420   : > { %p1855_p12 = scmp.lt.s32.totalorder %s1853_s18, %s1849_s20 }
 0x421   : > { %p1851_p4 = pnand %p1850_p10, %p2014_p9 }
 0x422   : > { %p1856_p8 = por %p1855_p12, %p1854_p2 }
 0x423   : > { %p1852_p13 = pneg %p1851_p4 }
 0x425   : > { %p1857_p0 = pnand %p1856_p8, %p1852_p13 }
 0x427   : > { %1860 = shalt.err (!%p1857_p0)
}
 0x428   : > { %s1923_s22 = smov 256   ;;  %s1924_s0 = smov 16  }
 0x429   : > { %1591 = dma.vmem_to_hbm [thread:$0]  (%p2014_p9), %s2720_s21, 1024, %s2718_s29, %s1388_s26, %s1923_s22, %s1923_s22, %s1924_s0  }
 0x42a PF: > { %s1418_s7 = sand.u32 1, %s1895_s23   ;;  %p2864_p1 = scmp.ge.s32.totalorder %s1915_s28, 2 }
 0x42b   : > { %s1419_s10 = scalar_lea.sflag [#allocation7], %s1418_s7 }
 0x42c   : > { %p1598_p3 = pnand %p2864_p1, %p2021_p11 }
 0x42e   : > { %p1599_p5 = pneg %p1598_p3 }
 0x430   : > { %1890 = dma.done.wait (%p1599_p5), %s1419_s10, 1024  }
 0x431   : > { %1892 = vsyncadd (%p1599_p5), %s1419_s10, 4294966272  ;;  %s23_s28 = sadd.s32 1, %s1915_s28   ;;  %s2865_s23 = smov %s1899_s24 }
 0x432   : > { %p20_p6 = scmp.ge.s32.totalorder %s23_s28, 4   ;;  %s2866_s24 = smov %s1903_s25 }
 0x433   : > { %s2867_s25 = smov %s2019_s12  ;;  %s2868_s26 = smov %s1911_s27 }
 0x434   : > { %s2869_s27 = smov %s2871_s30  ;;  %22 = sbr.rel (!%p20_p6) target bundleno = 8 (0x8), region = 96 }
 0x439   :  { %1424 = vsyncpa [#allocation6], 1 }
 0x43a   :  { %1426 = vsyncpa [#allocation6 + $0x1], 1 }
 0x43b   :  { %1427 = vsyncpa [#allocation7], 1 }
 0x43c   :  { %1429 = vsyncpa [#allocation7 + $0x1], 1 }

</bundles_post_ra>
